<compile_context>
chip_gen: v7x
topology: tpu7x:2x2x1
jax: 0.10.0
libtpu: 0.0.40
codegen_flags: <defaults>
</compile_context>

<pallas_src>
import jax
import jax.numpy as jnp
from jax import lax
from jax.experimental import pallas as pl
from jax.experimental.pallas import tpu as pltpu


def _head_kernel(x_ref, w1_ref, b1_ref, w2_ref, b2_ref, out_ref):
    """Per grid step: nb samples of conv1 -> relu -> maxpool(2) -> conv2."""
    nb, _, L = x_ref.shape
    Cp = b1_ref.shape[0]          # conv1 out-channels, padded to a multiple of 8
    Lh = out_ref.shape[-1]        # L // 2

    w1 = w1_ref[...]              # (3*Cp, C) bf16 -- three conv1 taps stacked on rows
    b1 = b1_ref[...]              # (Cp, 1)   f32
    w2 = w2_ref[...]              # (3, Cp)   f32  -- conv2 is tiny, kept f32
    b2 = b2_ref[...]              # (1, 1)    f32

    # Even-lane decimation matrix for MaxPool1d(2), built in-kernel from iota
    # (no resident HBM operand / pipeline buffer; a few hundred VPU cycles).
    row = lax.broadcasted_iota(jnp.int32, (L, Lh), 0)
    col = lax.broadcasted_iota(jnp.int32, (L, Lh), 1)
    sel = (row == 2 * col).astype(jnp.float32)                      # (L, Lh)

    lane = lax.broadcasted_iota(jnp.int32, (1, L), 1)
    lane_h = lax.broadcasted_iota(jnp.int32, (1, Lh), 1)

    for b in range(nb):           # nb is a small static constant (2)
        x = x_ref[b]              # (C, L) bf16 -> single bf16 MXU pass per matmul

        # conv1 (k=3, pad=1): ONE stacked bf16 matmul for all three taps; the
        # k=3 halo shift is applied to the (Cp, L) outputs instead of the input.
        H = jnp.dot(w1, x, preferred_element_type=jnp.float32)      # (3*Cp, L) f32
        h = H[Cp:2 * Cp]                                            # center tap
        h = h + jnp.where(lane == 0, 0.0,
                          pltpu.roll(H[0:Cp], 1, 1))                # x[:, l-1] tap
        h = h + jnp.where(lane == L - 1, 0.0,
                          pltpu.roll(H[2 * Cp:3 * Cp], L - 1, 1))   # x[:, l+1] tap
        h = jnp.maximum(h + b1, 0.0)                                # (Cp, L)

        # MaxPool1d(2) fused with conv2 (single output channel) by linearity:
        # contract the channel axis first (tiny (3,Cp)@(Cp,L) matmul), decimate
        # the even lanes of the 3 tap rows, then apply the k=3 halo on the
        # pooled outputs.  Exact: the max has already been applied.
        m = jnp.maximum(h, pltpu.roll(h, L - 1, 1))                 # m[:,l]=max(h[l],h[l+1])
        Q = jnp.dot(w2, m, preferred_element_type=jnp.float32)      # (3, L)
        Qd = jnp.dot(Q, sel, preferred_element_type=jnp.float32)    # (3, Lh)
        y = Qd[1:2]
        y = y + jnp.where(lane_h == 0, 0.0, pltpu.roll(Qd[0:1], 1, 1))
        y = y + jnp.where(lane_h == Lh - 1, 0.0, pltpu.roll(Qd[2:3], Lh - 1, 1))
        y = y + b2                                                  # (1, Lh)

        out_ref[b] = y.astype(out_ref.dtype)


def _const_spec(shape, single_buffer):
    """BlockSpec for an operand that is resident across the whole grid."""
    ndim = len(shape)
    if single_buffer:
        return pl.BlockSpec(shape, lambda g, _n=ndim: (0,) * _n,
                            pipeline_mode=pl.Buffered(1))
    return pl.BlockSpec(shape, lambda g, _n=ndim: (0,) * _n)


def _head_pallas(x, w1s, b1c, w2t, b2m, *, nb, single_buffer_weights):
    N, C, L = x.shape
    Cp = b1c.shape[0]
    Lh = L // 2
    assert N % nb == 0
    in_specs = [
        pl.BlockSpec((nb, C, L), lambda g: (g, 0, 0)),    # nb samples per step
        _const_spec((3 * Cp, C), single_buffer_weights),  # stacked conv1 taps
        _const_spec((Cp, 1), single_buffer_weights),      # conv1 bias
        _const_spec((3, Cp), single_buffer_weights),      # conv2 taps
        _const_spec((1, 1), single_buffer_weights),       # conv2 bias
    ]
    return pl.pallas_call(
        _head_kernel,
        out_shape=jax.ShapeDtypeStruct((N, 1, Lh), jnp.float32),
        grid=(N // nb,),
        in_specs=in_specs,
        out_specs=pl.BlockSpec((nb, 1, Lh), lambda g: (g, 0, 0)),
        compiler_params=pltpu.CompilerParams(
            dimension_semantics=("parallel",),            # v7x: shard over both TCs
            vmem_limit_bytes=48 * 1024 * 1024,            # > v5e 16MiB default, < v7x 64MiB phys
        ),
    )(x, w1s, b1c, w2t, b2m)


def contrastive_model_forward(input1, input2, w1, b1, w2, b2):
    """forward(input1, input2) of ContrastiveLearningModel_2 (post-backbone).

    input1, input2 : (B, C, L) token maps from the DINOv2 backbone
    w1 : (C//2, C, 3), b1 : (C//2,)   -- conv1
    w2 : (1, C//2, 3), b2 : (1,)      -- conv2
    returns (output1, output2), each (B, L//2) float32
    """
    B, C, L = input1.shape
    assert input2.shape == (B, C, L)
    assert C % 2 == 0 and L % 2 == 0
    Cm, Lh = C // 2, L // 2
    Cp = ((Cm + 7) // 8) * 8          # sublane-aligned channel padding

    # Both branches share weights -> one pipelined grid over 2B samples, 2/step.
    xcat = jnp.concatenate([input1, input2], axis=0).astype(jnp.bfloat16)  # (2B, C, L)
    nb = 2                            # 2B is always even; keep <=2 for v7x VMEM

    # conv1 taps stacked along the output-row axis, each tap zero-padded to Cp.
    w1_t = jnp.transpose(w1, (2, 0, 1))                              # (3, Cm, C)
    w1_p = jnp.pad(w1_t, ((0, 0), (0, Cp - Cm), (0, 0)))
    w1s = w1_p.reshape(3 * Cp, C).astype(jnp.bfloat16)               # (3*Cp, C)
    b1c = jnp.pad(b1, (0, Cp - Cm)).reshape(Cp, 1).astype(jnp.float32)
    w2t = jnp.pad(jnp.transpose(w2[0], (1, 0)),
                  ((0, 0), (0, Cp - Cm))).astype(jnp.float32)        # (3, Cp)
    b2m = b2.reshape(1, 1).astype(jnp.float32)

    try:
        out = _head_pallas(xcat, w1s, b1c, w2t, b2m, nb=nb,
                           single_buffer_weights=True)
    except Exception:
        # Fallback: some JAX versions may reject pl.Buffered(1); the default
        # double-buffered resident weights still fit the VMEM budget.
        out = _head_pallas(xcat, w1s, b1c, w2t, b2m, nb=nb,
                           single_buffer_weights=False)

    out = out[:, 0, :]                                               # (2B, Lh)
    return out[:B], out[B:]


def _reference_forward_one(x, w1, b1, w2, b2):
    """Pure-JAX mirror of forward_one's head (conv1 -> relu -> pool -> conv2)."""
    y = lax.conv_general_dilated(
        x.astype(jnp.float32), w1.astype(jnp.float32),
        window_strides=(1,), padding=((1, 1),),
        dimension_numbers=("NCH", "OIH", "NCH"),
        precision=lax.Precision.HIGHEST)
    y = jnp.maximum(y + b1[None, :, None], 0.0)
    N, Cm, L = y.shape
    y = jnp.max(y.reshape(N, Cm, L // 2, 2), axis=-1)                # MaxPool1d(2)
    y = lax.conv_general_dilated(
        y, w2.astype(jnp.float32),
        window_strides=(1,), padding=((1, 1),),
        dimension_numbers=("NCH", "OIH", "NCH"),
        precision=lax.Precision.HIGHEST)
    y = y + b2[None, :, None]
    return y[:, 0, :]


if __name__ == "__main__":
    # Small stand-ins for the real sizes (B, 900 tokens, 1024 features).
    B, C, L = 2, 16, 256
    Cm = C // 2

    key = jax.random.PRNGKey(0)
    k1, k2, kw1, kb1, kw2, kb2 = jax.random.split(key, 6)
    input1 = jax.random.normal(k1, (B, C, L), jnp.float32)
    input2 = jax.random.normal(k2, (B, C, L), jnp.float32)

    s1 = 1.0 / jnp.sqrt(jnp.float32(C * 3))
    w1 = jax.random.uniform(kw1, (Cm, C, 3), jnp.float32, -s1, s1)
    b1 = jax.random.uniform(kb1, (Cm,), jnp.float32, -s1, s1)
    s2 = 1.0 / jnp.sqrt(jnp.float32(Cm * 3))
    w2 = jax.random.uniform(kw2, (1, Cm, 3), jnp.float32, -s2, s2)
    b2 = jax.random.uniform(kb2, (1,), jnp.float32, -s2, s2)

    out1, out2 = contrastive_model_forward(input1, input2, w1, b1, w2, b2)
    out1, out2 = jax.block_until_ready((out1, out2))

    ref1 = _reference_forward_one(input1, w1, b1, w2, b2)
    ref2 = _reference_forward_one(input2, w1, b1, w2, b2)

    assert out1.shape == (B, L // 2) and out2.shape == (B, L // 2)
    # Tolerance sized for bf16 activation/weight operands with f32 accumulation.
    assert jnp.allclose(out1, ref1, rtol=2e-2, atol=2e-2), (out1, ref1)
    assert jnp.allclose(out2, ref2, rtol=2e-2, atol=2e-2), (out2, ref2)

    print("KERNEL_OK")
</pallas_src>

<mosaic_0001>
module attributes {stable_mosaic.version = 11 : i64} {
  func.func @_head_kernel(%arg0: i32, %arg1: memref<2x16x256xbf16, #tpu.memory_space<vmem>>, %arg2: memref<24x16xbf16, #tpu.memory_space<vmem>>, %arg3: memref<8x1xf32, #tpu.memory_space<vmem>>, %arg4: memref<3x8xf32, #tpu.memory_space<vmem>>, %arg5: memref<1x1xf32, #tpu.memory_space<vmem>>, %arg6: memref<2x1x128xf32, #tpu.memory_space<vmem>>) attributes {dimension_semantics = [#tpu.dimension_semantics<parallel>], iteration_bounds = array<i64: 2>, scalar_prefetch = 0 : i64, scratch_operands = 0 : i64, tpu.core_type = #tpu.core_type<tc>, window_params = [{transform_indices = @transform_0, window_bounds = array<i64: 2, 16, 256>}, {pipeline_mode = #tpu.pipeline_mode<synchronous>, transform_indices = @transform_1, window_bounds = array<i64: 24, 16>}, {pipeline_mode = #tpu.pipeline_mode<synchronous>, transform_indices = @transform_2, window_bounds = array<i64: 8, 1>}, {pipeline_mode = #tpu.pipeline_mode<synchronous>, transform_indices = @transform_3, window_bounds = array<i64: 3, 8>}, {pipeline_mode = #tpu.pipeline_mode<synchronous>, transform_indices = @transform_4, window_bounds = array<i64: 1, 1>}, {transform_indices = @transform_5, window_bounds = array<i64: 2, 1, 128>}]} {
    %c0 = arith.constant 0 : index
    %c0_0 = arith.constant 0 : index
    %0 = vector.load %arg2[%c0, %c0_0] : memref<24x16xbf16, #tpu.memory_space<vmem>>, vector<24x16xbf16>
    %c0_1 = arith.constant 0 : index
    %c0_2 = arith.constant 0 : index
    %1 = vector.load %arg3[%c0_1, %c0_2] : memref<8x1xf32, #tpu.memory_space<vmem>>, vector<8x1xf32>
    %c0_3 = arith.constant 0 : index
    %c0_4 = arith.constant 0 : index
    %2 = vector.load %arg4[%c0_3, %c0_4] : memref<3x8xf32, #tpu.memory_space<vmem>>, vector<3x8xf32>
    %c0_5 = arith.constant 0 : index
    %c0_6 = arith.constant 0 : index
    %3 = vector.load %arg5[%c0_5, %c0_6] : memref<1x1xf32, #tpu.memory_space<vmem>>, vector<1x1xf32>
    %4 = tpu.iota {dimensions = array<i32: 0>} : vector<256x128xi32>
    %5 = tpu.iota {dimensions = array<i32: 1>} : vector<256x128xi32>
    %c2_i32 = arith.constant 2 : i32
    %6 = vector.broadcast %c2_i32 : i32 to vector<256x128xi32>
    %7 = arith.muli %6, %5 : vector<256x128xi32>
    %8 = arith.cmpi eq, %4, %7 : vector<256x128xi32>
    %9 = arith.extui %8 : vector<256x128xi1> to vector<256x128xi32>
    %10 = arith.sitofp %9 : vector<256x128xi32> to vector<256x128xf32>
    %11 = tpu.iota {dimensions = array<i32: 1>} : vector<1x256xi32>
    %12 = tpu.iota {dimensions = array<i32: 1>} : vector<1x128xi32>
    %c0_7 = arith.constant 0 : index
    %c0_8 = arith.constant 0 : index
    %c0_9 = arith.constant 0 : index
    %13 = vector.load %arg1[%c0_7, %c0_8, %c0_9] : memref<2x16x256xbf16, #tpu.memory_space<vmem>>, vector<1x16x256xbf16>
    %14 = vector.shape_cast %13 : vector<1x16x256xbf16> to vector<16x256xbf16>
    %cst = arith.constant dense<0.000000e+00> : vector<24x256xf32>
    %15 = tpu.matmul %0, %14, %cst {dimension_numbers = #tpu.dot_dimension_numbers<[1], [0], [0], [1], [0, 0, 1, 1], [], []>} : vector<24x16xbf16>, vector<16x256xbf16>, vector<24x256xf32> -> vector<24x256xf32>
    %16 = vector.extract_strided_slice %15 {offsets = [8, 0], sizes = [8, 256], strides = [1, 1]} : vector<24x256xf32> to vector<8x256xf32>
    %c0_i32 = arith.constant 0 : i32
    %17 = vector.broadcast %c0_i32 : i32 to vector<1x256xi32>
    %18 = arith.cmpi eq, %11, %17 : vector<1x256xi32>
    %19 = vector.extract_strided_slice %15 {offsets = [0, 0], sizes = [8, 256], strides = [1, 1]} : vector<24x256xf32> to vector<8x256xf32>
    %c1_i32 = arith.constant 1 : i32
    %20 = tpu.dynamic_rotate %19 by %c1_i32 dim 1 : vector<8x256xf32>, i32 -> vector<8x256xf32>
    %cst_10 = arith.constant 0.000000e+00 : f32
    %21 = vector.shape_cast %18 : vector<1x256xi1> to vector<1x256xi1>
    %22 = vector.broadcast %21 : vector<1x256xi1> to vector<8x256xi1>
    %23 = vector.broadcast %cst_10 : f32 to vector<8x256xf32>
    %24 = arith.select %22, %23, %20 : vector<8x256xi1>, vector<8x256xf32>
    %25 = arith.addf %16, %24 : vector<8x256xf32>
    %c255_i32 = arith.constant 255 : i32
    %26 = vector.broadcast %c255_i32 : i32 to vector<1x256xi32>
    %27 = arith.cmpi eq, %11, %26 : vector<1x256xi32>
    %28 = vector.extract_strided_slice %15 {offsets = [16, 0], sizes = [8, 256], strides = [1, 1]} : vector<24x256xf32> to vector<8x256xf32>
    %c255_i32_11 = arith.constant 255 : i32
    %29 = tpu.dynamic_rotate %28 by %c255_i32_11 dim 1 : vector<8x256xf32>, i32 -> vector<8x256xf32>
    %cst_12 = arith.constant 0.000000e+00 : f32
    %30 = vector.shape_cast %27 : vector<1x256xi1> to vector<1x256xi1>
    %31 = vector.broadcast %30 : vector<1x256xi1> to vector<8x256xi1>
    %32 = vector.broadcast %cst_12 : f32 to vector<8x256xf32>
    %33 = arith.select %31, %32, %29 : vector<8x256xi1>, vector<8x256xf32>
    %34 = arith.addf %25, %33 : vector<8x256xf32>
    %35 = vector.broadcast %1 : vector<8x1xf32> to vector<8x256xf32>
    %36 = arith.addf %34, %35 : vector<8x256xf32>
    %cst_13 = arith.constant 0.000000e+00 : f32
    %37 = vector.broadcast %cst_13 : f32 to vector<8x256xf32>
    %38 = arith.maximumf %36, %37 : vector<8x256xf32>
    %c255_i32_14 = arith.constant 255 : i32
    %39 = tpu.dynamic_rotate %38 by %c255_i32_14 dim 1 : vector<8x256xf32>, i32 -> vector<8x256xf32>
    %40 = arith.maximumf %38, %39 : vector<8x256xf32>
    %cst_15 = arith.constant dense<0.000000e+00> : vector<3x256xf32>
    %41 = tpu.matmul %2, %40, %cst_15 {dimension_numbers = #tpu.dot_dimension_numbers<[1], [0], [0], [1], [0, 0, 1, 1], [], []>} : vector<3x8xf32>, vector<8x256xf32>, vector<3x256xf32> -> vector<3x256xf32>
    %cst_16 = arith.constant dense<0.000000e+00> : vector<3x128xf32>
    %42 = tpu.matmul %41, %10, %cst_16 {dimension_numbers = #tpu.dot_dimension_numbers<[1], [0], [0], [1], [0, 0, 1, 1], [], []>} : vector<3x256xf32>, vector<256x128xf32>, vector<3x128xf32> -> vector<3x128xf32>
    %43 = vector.extract_strided_slice %42 {offsets = [1, 0], sizes = [1, 128], strides = [1, 1]} : vector<3x128xf32> to vector<1x128xf32>
    %c0_i32_17 = arith.constant 0 : i32
    %44 = vector.broadcast %c0_i32_17 : i32 to vector<1x128xi32>
    %45 = arith.cmpi eq, %12, %44 : vector<1x128xi32>
    %46 = vector.extract_strided_slice %42 {offsets = [0, 0], sizes = [1, 128], strides = [1, 1]} : vector<3x128xf32> to vector<1x128xf32>
    %c1_i32_18 = arith.constant 1 : i32
    %47 = tpu.dynamic_rotate %46 by %c1_i32_18 dim 1 : vector<1x128xf32>, i32 -> vector<1x128xf32>
    %cst_19 = arith.constant 0.000000e+00 : f32
    %48 = vector.broadcast %cst_19 : f32 to vector<1x128xf32>
    %49 = arith.select %45, %48, %47 : vector<1x128xi1>, vector<1x128xf32>
    %50 = arith.addf %43, %49 : vector<1x128xf32>
    %c127_i32 = arith.constant 127 : i32
    %51 = vector.broadcast %c127_i32 : i32 to vector<1x128xi32>
    %52 = arith.cmpi eq, %12, %51 : vector<1x128xi32>
    %53 = vector.extract_strided_slice %42 {offsets = [2, 0], sizes = [1, 128], strides = [1, 1]} : vector<3x128xf32> to vector<1x128xf32>
    %c127_i32_20 = arith.constant 127 : i32
    %54 = tpu.dynamic_rotate %53 by %c127_i32_20 dim 1 : vector<1x128xf32>, i32 -> vector<1x128xf32>
    %cst_21 = arith.constant 0.000000e+00 : f32
    %55 = vector.broadcast %cst_21 : f32 to vector<1x128xf32>
    %56 = arith.select %52, %55, %54 : vector<1x128xi1>, vector<1x128xf32>
    %57 = arith.addf %50, %56 : vector<1x128xf32>
    %58 = vector.broadcast %3 : vector<1x1xf32> to vector<1x128xf32>
    %59 = arith.addf %57, %58 : vector<1x128xf32>
    %c0_22 = arith.constant 0 : index
    %c0_23 = arith.constant 0 : index
    %c0_24 = arith.constant 0 : index
    %60 = vector.load %arg6[%c0_22, %c0_23, %c0_24] : memref<2x1x128xf32, #tpu.memory_space<vmem>>, vector<1x1x128xf32>
    %61 = vector.shape_cast %60 : vector<1x1x128xf32> to vector<1x128xf32>
    %62 = vector.shape_cast %59 : vector<1x128xf32> to vector<1x1x128xf32>
    tpu.vector_store %arg6[%c0_22, %c0_23, %c0_24], %62 {strides = array<i32>} : memref<2x1x128xf32, #tpu.memory_space<vmem>>, vector<1x1x128xf32>,
    %c1 = arith.constant 1 : index
    %c0_25 = arith.constant 0 : index
    %c0_26 = arith.constant 0 : index
    %63 = vector.load %arg1[%c1, %c0_25, %c0_26] : memref<2x16x256xbf16, #tpu.memory_space<vmem>>, vector<1x16x256xbf16>
    %64 = vector.shape_cast %63 : vector<1x16x256xbf16> to vector<16x256xbf16>
    %cst_27 = arith.constant dense<0.000000e+00> : vector<24x256xf32>
    %65 = tpu.matmul %0, %64, %cst_27 {dimension_numbers = #tpu.dot_dimension_numbers<[1], [0], [0], [1], [0, 0, 1, 1], [], []>} : vector<24x16xbf16>, vector<16x256xbf16>, vector<24x256xf32> -> vector<24x256xf32>
    %66 = vector.extract_strided_slice %65 {offsets = [8, 0], sizes = [8, 256], strides = [1, 1]} : vector<24x256xf32> to vector<8x256xf32>
    %c0_i32_28 = arith.constant 0 : i32
    %67 = vector.broadcast %c0_i32_28 : i32 to vector<1x256xi32>
    %68 = arith.cmpi eq, %11, %67 : vector<1x256xi32>
    %69 = vector.extract_strided_slice %65 {offsets = [0, 0], sizes = [8, 256], strides = [1, 1]} : vector<24x256xf32> to vector<8x256xf32>
    %c1_i32_29 = arith.constant 1 : i32
    %70 = tpu.dynamic_rotate %69 by %c1_i32_29 dim 1 : vector<8x256xf32>, i32 -> vector<8x256xf32>
    %cst_30 = arith.constant 0.000000e+00 : f32
    %71 = vector.shape_cast %68 : vector<1x256xi1> to vector<1x256xi1>
    %72 = vector.broadcast %71 : vector<1x256xi1> to vector<8x256xi1>
    %73 = vector.broadcast %cst_30 : f32 to vector<8x256xf32>
    %74 = arith.select %72, %73, %70 : vector<8x256xi1>, vector<8x256xf32>
    %75 = arith.addf %66, %74 : vector<8x256xf32>
    %c255_i32_31 = arith.constant 255 : i32
    %76 = vector.broadcast %c255_i32_31 : i32 to vector<1x256xi32>
    %77 = arith.cmpi eq, %11, %76 : vector<1x256xi32>
    %78 = vector.extract_strided_slice %65 {offsets = [16, 0], sizes = [8, 256], strides = [1, 1]} : vector<24x256xf32> to vector<8x256xf32>
    %c255_i32_32 = arith.constant 255 : i32
    %79 = tpu.dynamic_rotate %78 by %c255_i32_32 dim 1 : vector<8x256xf32>, i32 -> vector<8x256xf32>
    %cst_33 = arith.constant 0.000000e+00 : f32
    %80 = vector.shape_cast %77 : vector<1x256xi1> to vector<1x256xi1>
    %81 = vector.broadcast %80 : vector<1x256xi1> to vector<8x256xi1>
    %82 = vector.broadcast %cst_33 : f32 to vector<8x256xf32>
    %83 = arith.select %81, %82, %79 : vector<8x256xi1>, vector<8x256xf32>
    %84 = arith.addf %75, %83 : vector<8x256xf32>
    %85 = vector.broadcast %1 : vector<8x1xf32> to vector<8x256xf32>
    %86 = arith.addf %84, %85 : vector<8x256xf32>
    %cst_34 = arith.constant 0.000000e+00 : f32
    %87 = vector.broadcast %cst_34 : f32 to vector<8x256xf32>
    %88 = arith.maximumf %86, %87 : vector<8x256xf32>
    %c255_i32_35 = arith.constant 255 : i32
    %89 = tpu.dynamic_rotate %88 by %c255_i32_35 dim 1 : vector<8x256xf32>, i32 -> vector<8x256xf32>
    %90 = arith.maximumf %88, %89 : vector<8x256xf32>
    %cst_36 = arith.constant dense<0.000000e+00> : vector<3x256xf32>
    %91 = tpu.matmul %2, %90, %cst_36 {dimension_numbers = #tpu.dot_dimension_numbers<[1], [0], [0], [1], [0, 0, 1, 1], [], []>} : vector<3x8xf32>, vector<8x256xf32>, vector<3x256xf32> -> vector<3x256xf32>
    %cst_37 = arith.constant dense<0.000000e+00> : vector<3x128xf32>
    %92 = tpu.matmul %91, %10, %cst_37 {dimension_numbers = #tpu.dot_dimension_numbers<[1], [0], [0], [1], [0, 0, 1, 1], [], []>} : vector<3x256xf32>, vector<256x128xf32>, vector<3x128xf32> -> vector<3x128xf32>
    %93 = vector.extract_strided_slice %92 {offsets = [1, 0], sizes = [1, 128], strides = [1, 1]} : vector<3x128xf32> to vector<1x128xf32>
    %c0_i32_38 = arith.constant 0 : i32
    %94 = vector.broadcast %c0_i32_38 : i32 to vector<1x128xi32>
    %95 = arith.cmpi eq, %12, %94 : vector<1x128xi32>
    %96 = vector.extract_strided_slice %92 {offsets = [0, 0], sizes = [1, 128], strides = [1, 1]} : vector<3x128xf32> to vector<1x128xf32>
    %c1_i32_39 = arith.constant 1 : i32
    %97 = tpu.dynamic_rotate %96 by %c1_i32_39 dim 1 : vector<1x128xf32>, i32 -> vector<1x128xf32>
    %cst_40 = arith.constant 0.000000e+00 : f32
    %98 = vector.broadcast %cst_40 : f32 to vector<1x128xf32>
    %99 = arith.select %95, %98, %97 : vector<1x128xi1>, vector<1x128xf32>
    %100 = arith.addf %93, %99 : vector<1x128xf32>
    %c127_i32_41 = arith.constant 127 : i32
    %101 = vector.broadcast %c127_i32_41 : i32 to vector<1x128xi32>
    %102 = arith.cmpi eq, %12, %101 : vector<1x128xi32>
    %103 = vector.extract_strided_slice %92 {offsets = [2, 0], sizes = [1, 128], strides = [1, 1]} : vector<3x128xf32> to vector<1x128xf32>
    %c127_i32_42 = arith.constant 127 : i32
    %104 = tpu.dynamic_rotate %103 by %c127_i32_42 dim 1 : vector<1x128xf32>, i32 -> vector<1x128xf32>
    %cst_43 = arith.constant 0.000000e+00 : f32
    %105 = vector.broadcast %cst_43 : f32 to vector<1x128xf32>
    %106 = arith.select %102, %105, %104 : vector<1x128xi1>, vector<1x128xf32>
    %107 = arith.addf %100, %106 : vector<1x128xf32>
    %108 = vector.broadcast %3 : vector<1x1xf32> to vector<1x128xf32>
    %109 = arith.addf %107, %108 : vector<1x128xf32>
    %c1_44 = arith.constant 1 : index
    %c0_45 = arith.constant 0 : index
    %c0_46 = arith.constant 0 : index
    %110 = vector.load %arg6[%c1_44, %c0_45, %c0_46] : memref<2x1x128xf32, #tpu.memory_space<vmem>>, vector<1x1x128xf32>
    %111 = vector.shape_cast %110 : vector<1x1x128xf32> to vector<1x128xf32>
    %112 = vector.shape_cast %109 : vector<1x128xf32> to vector<1x1x128xf32>
    tpu.vector_store %arg6[%c1_44, %c0_45, %c0_46], %112 {strides = array<i32>} : memref<2x1x128xf32, #tpu.memory_space<vmem>>, vector<1x1x128xf32>,
    return
  }
  func.func @transform_0(%arg0: i32) -> (i32, i32, i32) {
    %c0_i32 = arith.constant 0 : i32
    %c0_i32_0 = arith.constant 0 : i32
    %c0_i32_1 = arith.constant 0 : i32
    return %arg0, %c0_i32, %c0_i32_0 : i32, i32, i32
  }
  func.func @transform_1(%arg0: i32) -> (i32, i32) {
    %c0_i32 = arith.constant 0 : i32
    %c0_i32_0 = arith.constant 0 : i32
    %c0_i32_1 = arith.constant 0 : i32
    return %c0_i32, %c0_i32_0 : i32, i32
  }
  func.func @transform_2(%arg0: i32) -> (i32, i32) {
    %c0_i32 = arith.constant 0 : i32
    %c0_i32_0 = arith.constant 0 : i32
    %c0_i32_1 = arith.constant 0 : i32
    return %c0_i32, %c0_i32_0 : i32, i32
  }
  func.func @transform_3(%arg0: i32) -> (i32, i32) {
    %c0_i32 = arith.constant 0 : i32
    %c0_i32_0 = arith.constant 0 : i32
    %c0_i32_1 = arith.constant 0 : i32
    return %c0_i32, %c0_i32_0 : i32, i32
  }
  func.func @transform_4(%arg0: i32) -> (i32, i32) {
    %c0_i32 = arith.constant 0 : i32
    %c0_i32_0 = arith.constant 0 : i32
    %c0_i32_1 = arith.constant 0 : i32
    return %c0_i32, %c0_i32_0 : i32, i32
  }
  func.func @transform_5(%arg0: i32) -> (i32, i32, i32) {
    %c0_i32 = arith.constant 0 : i32
    %c0_i32_0 = arith.constant 0 : i32
    %c0_i32_1 = arith.constant 0 : i32
    return %arg0, %c0_i32, %c0_i32_0 : i32, i32, i32
  }
}

module attributes {stable_mosaic.version = 11 : i64} {
  func.func @_head_kernel(%arg0: i32, %arg1: memref<2x16x256xbf16, #tpu.memory_space<vmem>>, %arg2: memref<24x16xbf16, #tpu.memory_space<vmem>>, %arg3: memref<8x1xf32, #tpu.memory_space<vmem>>, %arg4: memref<3x8xf32, #tpu.memory_space<vmem>>, %arg5: memref<1x1xf32, #tpu.memory_space<vmem>>, %arg6: memref<2x1x128xf32, #tpu.memory_space<vmem>>) attributes {dimension_semantics = [#tpu.dimension_semantics<parallel>], iteration_bounds = array<i64: 2>, scalar_prefetch = 0 : i64, scratch_operands = 0 : i64, tpu.core_type = #tpu.core_type<tc>, window_params = [{transform_indices = @transform_0, window_bounds = array<i64: 2, 16, 256>}, {pipeline_mode = #tpu.pipeline_mode<synchronous>, transform_indices = @transform_1, window_bounds = array<i64: 24, 16>}, {pipeline_mode = #tpu.pipeline_mode<synchronous>, transform_indices = @transform_2, window_bounds = array<i64: 8, 1>}, {pipeline_mode = #tpu.pipeline_mode<synchronous>, transform_indices = @transform_3, window_bounds = array<i64: 3, 8>}, {pipeline_mode = #tpu.pipeline_mode<synchronous>, transform_indices = @transform_4, window_bounds = array<i64: 1, 1>}, {transform_indices = @transform_5, window_bounds = array<i64: 2, 1, 128>}]} {
    %c0 = arith.constant 0 : index
    %c0_0 = arith.constant 0 : index
    %0 = vector.load %arg2[%c0, %c0_0] : memref<24x16xbf16, #tpu.memory_space<vmem>>, vector<24x16xbf16>
    %c0_1 = arith.constant 0 : index
    %c0_2 = arith.constant 0 : index
    %1 = vector.load %arg3[%c0_1, %c0_2] : memref<8x1xf32, #tpu.memory_space<vmem>>, vector<8x1xf32>
    %c0_3 = arith.constant 0 : index
    %c0_4 = arith.constant 0 : index
    %2 = vector.load %arg4[%c0_3, %c0_4] : memref<3x8xf32, #tpu.memory_space<vmem>>, vector<3x8xf32>
    %c0_5 = arith.constant 0 : index
    %c0_6 = arith.constant 0 : index
    %3 = vector.load %arg5[%c0_5, %c0_6] : memref<1x1xf32, #tpu.memory_space<vmem>>, vector<1x1xf32>
    %4 = tpu.iota {dimensions = array<i32: 0>} : vector<256x128xi32>
    %5 = tpu.iota {dimensions = array<i32: 1>} : vector<256x128xi32>
    %c2_i32 = arith.constant 2 : i32
    %6 = vector.broadcast %c2_i32 : i32 to vector<256x128xi32>
    %7 = arith.muli %6, %5 : vector<256x128xi32>
    %8 = arith.cmpi eq, %4, %7 : vector<256x128xi32>
    %9 = arith.extui %8 : vector<256x128xi1> to vector<256x128xi32>
    %10 = arith.sitofp %9 : vector<256x128xi32> to vector<256x128xf32>
    %11 = tpu.iota {dimensions = array<i32: 1>} : vector<1x256xi32>
    %12 = tpu.iota {dimensions = array<i32: 1>} : vector<1x128xi32>
    %c0_7 = arith.constant 0 : index
    %c0_8 = arith.constant 0 : index
    %c0_9 = arith.constant 0 : index
    %13 = vector.load %arg1[%c0_7, %c0_8, %c0_9] : memref<2x16x256xbf16, #tpu.memory_space<vmem>>, vector<1x16x256xbf16>
    %14 = vector.shape_cast %13 : vector<1x16x256xbf16> to vector<16x256xbf16>
    %cst = arith.constant dense<0.000000e+00> : vector<24x256xf32>
    %15 = tpu.matmul %0, %14, %cst {dimension_numbers = #tpu.dot_dimension_numbers<[1], [0], [0], [1], [0, 0, 1, 1], [], []>} : vector<24x16xbf16>, vector<16x256xbf16>, vector<24x256xf32> -> vector<24x256xf32>
    %16 = vector.extract_strided_slice %15 {offsets = [8, 0], sizes = [8, 256], strides = [1, 1]} : vector<24x256xf32> to vector<8x256xf32>
    %c0_i32 = arith.constant 0 : i32
    %17 = vector.broadcast %c0_i32 : i32 to vector<1x256xi32>
    %18 = arith.cmpi eq, %11, %17 : vector<1x256xi32>
    %19 = vector.extract_strided_slice %15 {offsets = [0, 0], sizes = [8, 256], strides = [1, 1]} : vector<24x256xf32> to vector<8x256xf32>
    %c1_i32 = arith.constant 1 : i32
    %20 = tpu.dynamic_rotate %19 by %c1_i32 dim 1 : vector<8x256xf32>, i32 -> vector<8x256xf32>
    %cst_10 = arith.constant 0.000000e+00 : f32
    %21 = vector.shape_cast %18 : vector<1x256xi1> to vector<1x256xi1>
    %22 = vector.broadcast %21 : vector<1x256xi1> to vector<8x256xi1>
    %23 = vector.broadcast %cst_10 : f32 to vector<8x256xf32>
    %24 = arith.select %22, %23, %20 : vector<8x256xi1>, vector<8x256xf32>
    %25 = arith.addf %16, %24 : vector<8x256xf32>
    %c255_i32 = arith.constant 255 : i32
    %26 = vector.broadcast %c255_i32 : i32 to vector<1x256xi32>
    %27 = arith.cmpi eq, %11, %26 : vector<1x256xi32>
    %28 = vector.extract_strided_slice %15 {offsets = [16, 0], sizes = [8, 256], strides = [1, 1]} : vector<24x256xf32> to vector<8x256xf32>
    %c255_i32_11 = arith.constant 255 : i32
    %29 = tpu.dynamic_rotate %28 by %c255_i32_11 dim 1 : vector<8x256xf32>, i32 -> vector<8x256xf32>
    %cst_12 = arith.constant 0.000000e+00 : f32
    %30 = vector.shape_cast %27 : vector<1x256xi1> to vector<1x256xi1>
    %31 = vector.broadcast %30 : vector<1x256xi1> to vector<8x256xi1>
    %32 = vector.broadcast %cst_12 : f32 to vector<8x256xf32>
    %33 = arith.select %31, %32, %29 : vector<8x256xi1>, vector<8x256xf32>
    %34 = arith.addf %25, %33 : vector<8x256xf32>
    %35 = vector.broadcast %1 : vector<8x1xf32> to vector<8x256xf32>
    %36 = arith.addf %34, %35 : vector<8x256xf32>
    %cst_13 = arith.constant 0.000000e+00 : f32
    %37 = vector.broadcast %cst_13 : f32 to vector<8x256xf32>
    %38 = arith.maximumf %36, %37 : vector<8x256xf32>
    %c255_i32_14 = arith.constant 255 : i32
    %39 = tpu.dynamic_rotate %38 by %c255_i32_14 dim 1 : vector<8x256xf32>, i32 -> vector<8x256xf32>
    %40 = arith.maximumf %38, %39 : vector<8x256xf32>
    %cst_15 = arith.constant dense<0.000000e+00> : vector<3x256xf32>
    %41 = tpu.matmul %2, %40, %cst_15 {dimension_numbers = #tpu.dot_dimension_numbers<[1], [0], [0], [1], [0, 0, 1, 1], [], []>} : vector<3x8xf32>, vector<8x256xf32>, vector<3x256xf32> -> vector<3x256xf32>
    %cst_16 = arith.constant dense<0.000000e+00> : vector<3x128xf32>
    %42 = tpu.matmul %41, %10, %cst_16 {dimension_numbers = #tpu.dot_dimension_numbers<[1], [0], [0], [1], [0, 0, 1, 1], [], []>} : vector<3x256xf32>, vector<256x128xf32>, vector<3x128xf32> -> vector<3x128xf32>
    %43 = vector.extract_strided_slice %42 {offsets = [1, 0], sizes = [1, 128], strides = [1, 1]} : vector<3x128xf32> to vector<1x128xf32>
    %c0_i32_17 = arith.constant 0 : i32
    %44 = vector.broadcast %c0_i32_17 : i32 to vector<1x128xi32>
    %45 = arith.cmpi eq, %12, %44 : vector<1x128xi32>
    %46 = vector.extract_strided_slice %42 {offsets = [0, 0], sizes = [1, 128], strides = [1, 1]} : vector<3x128xf32> to vector<1x128xf32>
    %c1_i32_18 = arith.constant 1 : i32
    %47 = tpu.dynamic_rotate %46 by %c1_i32_18 dim 1 : vector<1x128xf32>, i32 -> vector<1x128xf32>
    %cst_19 = arith.constant 0.000000e+00 : f32
    %48 = vector.broadcast %cst_19 : f32 to vector<1x128xf32>
    %49 = arith.select %45, %48, %47 : vector<1x128xi1>, vector<1x128xf32>
    %50 = arith.addf %43, %49 : vector<1x128xf32>
    %c127_i32 = arith.constant 127 : i32
    %51 = vector.broadcast %c127_i32 : i32 to vector<1x128xi32>
    %52 = arith.cmpi eq, %12, %51 : vector<1x128xi32>
    %53 = vector.extract_strided_slice %42 {offsets = [2, 0], sizes = [1, 128], strides = [1, 1]} : vector<3x128xf32> to vector<1x128xf32>
    %c127_i32_20 = arith.constant 127 : i32
    %54 = tpu.dynamic_rotate %53 by %c127_i32_20 dim 1 : vector<1x128xf32>, i32 -> vector<1x128xf32>
    %cst_21 = arith.constant 0.000000e+00 : f32
    %55 = vector.broadcast %cst_21 : f32 to vector<1x128xf32>
    %56 = arith.select %52, %55, %54 : vector<1x128xi1>, vector<1x128xf32>
    %57 = arith.addf %50, %56 : vector<1x128xf32>
    %58 = vector.broadcast %3 : vector<1x1xf32> to vector<1x128xf32>
    %59 = arith.addf %57, %58 : vector<1x128xf32>
    %c0_22 = arith.constant 0 : index
    %c0_23 = arith.constant 0 : index
    %c0_24 = arith.constant 0 : index
    %60 = vector.load %arg6[%c0_22, %c0_23, %c0_24] : memref<2x1x128xf32, #tpu.memory_space<vmem>>, vector<1x1x128xf32>
    %61 = vector.shape_cast %60 : vector<1x1x128xf32> to vector<1x128xf32>
    %62 = vector.shape_cast %59 : vector<1x128xf32> to vector<1x1x128xf32>
    tpu.vector_store %arg6[%c0_22, %c0_23, %c0_24], %62 {strides = array<i32>} : memref<2x1x128xf32, #tpu.memory_space<vmem>>, vector<1x1x128xf32>,
    %c1 = arith.constant 1 : index
    %c0_25 = arith.constant 0 : index
    %c0_26 = arith.constant 0 : index
    %63 = vector.load %arg1[%c1, %c0_25, %c0_26] : memref<2x16x256xbf16, #tpu.memory_space<vmem>>, vector<1x16x256xbf16>
    %64 = vector.shape_cast %63 : vector<1x16x256xbf16> to vector<16x256xbf16>
    %cst_27 = arith.constant dense<0.000000e+00> : vector<24x256xf32>
    %65 = tpu.matmul %0, %64, %cst_27 {dimension_numbers = #tpu.dot_dimension_numbers<[1], [0], [0], [1], [0, 0, 1, 1], [], []>} : vector<24x16xbf16>, vector<16x256xbf16>, vector<24x256xf32> -> vector<24x256xf32>
    %66 = vector.extract_strided_slice %65 {offsets = [8, 0], sizes = [8, 256], strides = [1, 1]} : vector<24x256xf32> to vector<8x256xf32>
    %c0_i32_28 = arith.constant 0 : i32
    %67 = vector.broadcast %c0_i32_28 : i32 to vector<1x256xi32>
    %68 = arith.cmpi eq, %11, %67 : vector<1x256xi32>
    %69 = vector.extract_strided_slice %65 {offsets = [0, 0], sizes = [8, 256], strides = [1, 1]} : vector<24x256xf32> to vector<8x256xf32>
    %c1_i32_29 = arith.constant 1 : i32
    %70 = tpu.dynamic_rotate %69 by %c1_i32_29 dim 1 : vector<8x256xf32>, i32 -> vector<8x256xf32>
    %cst_30 = arith.constant 0.000000e+00 : f32
    %71 = vector.shape_cast %68 : vector<1x256xi1> to vector<1x256xi1>
    %72 = vector.broadcast %71 : vector<1x256xi1> to vector<8x256xi1>
    %73 = vector.broadcast %cst_30 : f32 to vector<8x256xf32>
    %74 = arith.select %72, %73, %70 : vector<8x256xi1>, vector<8x256xf32>
    %75 = arith.addf %66, %74 : vector<8x256xf32>
    %c255_i32_31 = arith.constant 255 : i32
    %76 = vector.broadcast %c255_i32_31 : i32 to vector<1x256xi32>
    %77 = arith.cmpi eq, %11, %76 : vector<1x256xi32>
    %78 = vector.extract_strided_slice %65 {offsets = [16, 0], sizes = [8, 256], strides = [1, 1]} : vector<24x256xf32> to vector<8x256xf32>
    %c255_i32_32 = arith.constant 255 : i32
    %79 = tpu.dynamic_rotate %78 by %c255_i32_32 dim 1 : vector<8x256xf32>, i32 -> vector<8x256xf32>
    %cst_33 = arith.constant 0.000000e+00 : f32
    %80 = vector.shape_cast %77 : vector<1x256xi1> to vector<1x256xi1>
    %81 = vector.broadcast %80 : vector<1x256xi1> to vector<8x256xi1>
    %82 = vector.broadcast %cst_33 : f32 to vector<8x256xf32>
    %83 = arith.select %81, %82, %79 : vector<8x256xi1>, vector<8x256xf32>
    %84 = arith.addf %75, %83 : vector<8x256xf32>
    %85 = vector.broadcast %1 : vector<8x1xf32> to vector<8x256xf32>
    %86 = arith.addf %84, %85 : vector<8x256xf32>
    %cst_34 = arith.constant 0.000000e+00 : f32
    %87 = vector.broadcast %cst_34 : f32 to vector<8x256xf32>
    %88 = arith.maximumf %86, %87 : vector<8x256xf32>
    %c255_i32_35 = arith.constant 255 : i32
    %89 = tpu.dynamic_rotate %88 by %c255_i32_35 dim 1 : vector<8x256xf32>, i32 -> vector<8x256xf32>
    %90 = arith.maximumf %88, %89 : vector<8x256xf32>
    %cst_36 = arith.constant dense<0.000000e+00> : vector<3x256xf32>
    %91 = tpu.matmul %2, %90, %cst_36 {dimension_numbers = #tpu.dot_dimension_numbers<[1], [0], [0], [1], [0, 0, 1, 1], [], []>} : vector<3x8xf32>, vector<8x256xf32>, vector<3x256xf32> -> vector<3x256xf32>
    %cst_37 = arith.constant dense<0.000000e+00> : vector<3x128xf32>
    %92 = tpu.matmul %91, %10, %cst_37 {dimension_numbers = #tpu.dot_dimension_numbers<[1], [0], [0], [1], [0, 0, 1, 1], [], []>} : vector<3x256xf32>, vector<256x128xf32>, vector<3x128xf32> -> vector<3x128xf32>
    %93 = vector.extract_strided_slice %92 {offsets = [1, 0], sizes = [1, 128], strides = [1, 1]} : vector<3x128xf32> to vector<1x128xf32>
    %c0_i32_38 = arith.constant 0 : i32
    %94 = vector.broadcast %c0_i32_38 : i32 to vector<1x128xi32>
    %95 = arith.cmpi eq, %12, %94 : vector<1x128xi32>
    %96 = vector.extract_strided_slice %92 {offsets = [0, 0], sizes = [1, 128], strides = [1, 1]} : vector<3x128xf32> to vector<1x128xf32>
    %c1_i32_39 = arith.constant 1 : i32
    %97 = tpu.dynamic_rotate %96 by %c1_i32_39 dim 1 : vector<1x128xf32>, i32 -> vector<1x128xf32>
    %cst_40 = arith.constant 0.000000e+00 : f32
    %98 = vector.broadcast %cst_40 : f32 to vector<1x128xf32>
    %99 = arith.select %95, %98, %97 : vector<1x128xi1>, vector<1x128xf32>
    %100 = arith.addf %93, %99 : vector<1x128xf32>
    %c127_i32_41 = arith.constant 127 : i32
    %101 = vector.broadcast %c127_i32_41 : i32 to vector<1x128xi32>
    %102 = arith.cmpi eq, %12, %101 : vector<1x128xi32>
    %103 = vector.extract_strided_slice %92 {offsets = [2, 0], sizes = [1, 128], strides = [1, 1]} : vector<3x128xf32> to vector<1x128xf32>
    %c127_i32_42 = arith.constant 127 : i32
    %104 = tpu.dynamic_rotate %103 by %c127_i32_42 dim 1 : vector<1x128xf32>, i32 -> vector<1x128xf32>
    %cst_43 = arith.constant 0.000000e+00 : f32
    %105 = vector.broadcast %cst_43 : f32 to vector<1x128xf32>
    %106 = arith.select %102, %105, %104 : vector<1x128xi1>, vector<1x128xf32>
    %107 = arith.addf %100, %106 : vector<1x128xf32>
    %108 = vector.broadcast %3 : vector<1x1xf32> to vector<1x128xf32>
    %109 = arith.addf %107, %108 : vector<1x128xf32>
    %c1_44 = arith.constant 1 : index
    %c0_45 = arith.constant 0 : index
    %c0_46 = arith.constant 0 : index
    %110 = vector.load %arg6[%c1_44, %c0_45, %c0_46] : memref<2x1x128xf32, #tpu.memory_space<vmem>>, vector<1x1x128xf32>
    %111 = vector.shape_cast %110 : vector<1x1x128xf32> to vector<1x128xf32>
    %112 = vector.shape_cast %109 : vector<1x128xf32> to vector<1x1x128xf32>
    tpu.vector_store %arg6[%c1_44, %c0_45, %c0_46], %112 {strides = array<i32>} : memref<2x1x128xf32, #tpu.memory_space<vmem>>, vector<1x1x128xf32>,
    return
  }
  func.func @transform_0(%arg0: i32) -> (i32, i32, i32) {
    %c0_i32 = arith.constant 0 : i32
    %c0_i32_0 = arith.constant 0 : i32
    %c0_i32_1 = arith.constant 0 : i32
    return %arg0, %c0_i32, %c0_i32_0 : i32, i32, i32
  }
  func.func @transform_1(%arg0: i32) -> (i32, i32) {
    %c0_i32 = arith.constant 0 : i32
    %c0_i32_0 = arith.constant 0 : i32
    %c0_i32_1 = arith.constant 0 : i32
    return %c0_i32, %c0_i32_0 : i32, i32
  }
  func.func @transform_2(%arg0: i32) -> (i32, i32) {
    %c0_i32 = arith.constant 0 : i32
    %c0_i32_0 = arith.constant 0 : i32
    %c0_i32_1 = arith.constant 0 : i32
    return %c0_i32, %c0_i32_0 : i32, i32
  }
  func.func @transform_3(%arg0: i32) -> (i32, i32) {
    %c0_i32 = arith.constant 0 : i32
    %c0_i32_0 = arith.constant 0 : i32
    %c0_i32_1 = arith.constant 0 : i32
    return %c0_i32, %c0_i32_0 : i32, i32
  }
  func.func @transform_4(%arg0: i32) -> (i32, i32) {
    %c0_i32 = arith.constant 0 : i32
    %c0_i32_0 = arith.constant 0 : i32
    %c0_i32_1 = arith.constant 0 : i32
    return %c0_i32, %c0_i32_0 : i32, i32
  }
  func.func @transform_5(%arg0: i32) -> (i32, i32, i32) {
    %c0_i32 = arith.constant 0 : i32
    %c0_i32_0 = arith.constant 0 : i32
    %c0_i32_1 = arith.constant 0 : i32
    return %arg0, %c0_i32, %c0_i32_0 : i32, i32, i32
  }
}

</mosaic_0001>

<bundles_post_ra>
// kernel: tpu_custom_call.1
= control target key start
LH: loop header
LB: loop body
LE: loop exit
PB: predicated region body
PF: predicated region fallthrough
CT: control target
= control target key end

     0   :  { %s2024_s0 = inlined_call_operand.hbm [shape: bf16[4,16,256], index: 0, kind: input, shape index: {}]   ;;  %s2025_s1 = inlined_call_operand.vmem [shape: bf16[24,16], index: 1, kind: input, shape index: {}]   ;;  %s2026_s2 = inlined_call_operand.vmem [shape: f32[8,1], index: 2, kind: input, shape index: {}]   ;;  %s2027_s3 = inlined_call_operand.vmem [shape: f32[3,8], index: 3, kind: input, shape index: {}]   ;;  %s2028_s4 = inlined_call_operand.<no memory space> [shape: f32[1,1], index: 4, kind: input, shape index: {}]   ;;  %s2029_s5 = inlined_call_operand.hbm [shape: f32[4,1,128], index: 5, kind: output, shape index: {}]  }
   0x1   :  { %v10_v0 = vstv %s2028_s4 }
   0x2   :  { %11 = vst [vmem:[#allocation2] sm:$0x1] %v10_v0 }
   0x3   :  { %12 = vsyncpa [#allocation4], 0 }
   0x4   :  { %14 = vsyncpa [#allocation4 + $0x1], 0 }
   0x5   :  { %15 = vsyncpa [#allocation5], 0 }
   0x6   :  { %17 = vsyncpa [#allocation5 + $0x1], 0  ;;  %s1503_s20 = smov 0   ;;  %s1505_s21 = smov 0  }
   0x7   :  { %s1507_s22 = smov 0   ;;  %s1509_s23 = smov 0  }
   0x8 LB: > { %s1524_s4 = sadd.s32 4294967295, %s1458_s23   ;;  %s1035_s24 = sadd.s32 4294967294, %s1458_s23   ;;  %s1458_s23 = sphi %s1509_s23, %s2100_s23   ;;  %s1454_s22 = sphi %s1507_s22, %s2099_s22   ;;  %s1450_s21 = sphi %s1505_s21, %s2098_s21   ;;  %s1446_s20 = sphi %s1503_s20, %s2097_s20  }
   0x9   : > { %s1528_s25 = sadd.s32 1, %s1458_s23   ;;  %s30_s26 = sadd.s32 1, %s1454_s22 }
   0xa   : > { %s27_s27 = ssub.s32 %s1458_s23, %s1528_s25  ;;  %p37_p0 = scmp.ne.s32.totalorder %s1454_s22, %s1450_s21 }
   0xb   : > { %p28_p1 = scmp.eq.s32.totalorder %s27_s27, 0  ;;  %p38_p2 = scmp.eq.s32.totalorder %s1458_s23, 0 }
   0xc   : > { %p43_p3 = scmp.ne.s32.totalorder %s1450_s21, %s1446_s20  ;;  %p44_p4 = scmp.eq.s32.totalorder %s1524_s4, 0 }
   0xd   : > { %s1540_s28 = scalar_select %p28_p1, %s1454_s22, %s30_s26  }
   0xe   : > { %p1542_p5 = por %p38_p2, %p37_p0  ;;  %p1546_p6 = por %p44_p4, %p43_p3 }
   0xf   : > { %p151_p7 = scmp.eq.s32.totalorder %s1524_s4, 1  ;;  %p157_p8 = scmp.eq.s32.totalorder %s1035_s24, 1 }
  0x10   : > { %p1310_p10 = scmp.lt.s32.totalorder %s1458_s23, 2  ;;  %s189_s8 = sand.u32 1, %s1454_s22  }
  0x11   : > { %p1553_p11 = por %p151_p7, %p37_p0  ;;  %p1557_p12 = por %p157_p8, %p43_p3 }
  0x12   : > { %s1162_s9 = sshll.u32 %s1458_s23, 9  ;;  %s1038_s10 = sshll.u32 %s189_s8, 5 }
  0x13   : > { %s2043_s6 = scalar_select %p1553_p11, 1, 0 }
  0x14   : > { %s2044_s7 = scalar_select %p1557_p12, 1, 0 }
  0x15   : > { %s1566_s13 = scalar_lea.hbm %s2024_s0, %s1162_s9  ;;  %s193_s14 = scalar_lea.vmem [#allocation3], %s1038_s10 }
  0x16   : > { %s201_s15 = sshll.u32 %s193_s14, 4  ;;  %p1570_p13 = pnand %p1310_p10, %p1542_p5  ;;  %s1574_s15 = int_to_ptr.vmem [resolvable:$true] %s201_s15 }
  0x17   : > { %s1576_s17 = scalar_lea.sflag [#allocation4], %s189_s8  ;;  %s1362_s18 = scalar_lea.hbm %s1566_s13, 512 }
  0x18   : > { %p1363_p0 = scmp.ne.s32.totalorder %s1566_s13, %s1362_s18  ;;  %p1364_p1 = pneg %p1570_p13 }
  0x19   : > { %s1367_s26 = scalar_lea.hbm %s2024_s0, 1024  ;;  %p1368_p4 = scmp.lt.u32.totalorder %s1566_s13, %s2024_s0 }
  0x1a   : > { %p1365_p2 = pnand %p1364_p1, %p1363_p0  ;;  %p1369_p5 = scmp.lt.u32.totalorder %s1367_s26, %s1362_s18 }
  0x1b   : > { %p1371_p8 = scmp.lt.u32.totalorder %s1362_s18, %s1566_s13 }
  0x1c   : > { %p1366_p3 = pneg %p1365_p2  ;;  %p1370_p7 = por %p1369_p5, %p1368_p4 }
  0x1e   : > { %p1372_p10 = por %p1371_p8, %p1370_p7 }
  0x20   : > { %p1373_p9 = pnand %p1372_p10, %p1366_p3 }
  0x22   : > { %1376 = shalt.err (!%p1373_p9)
}
  0x23   : > { %s1377_s8 = scalar_lea.vmem %s1574_s15, 512  ;;  %s1460_s9 = smov [#allocation3]  }
  0x24   : > { %p1378_p0 = scmp.ne.s32.totalorder %s1574_s15, %s1377_s8  ;;  %s1382_s10 = sshll.u32 %s1460_s9, 4  ;;  %s1383_s10 = int_to_ptr.vmem [resolvable:$false] %s1382_s10 }
  0x25   : > { %s1384_s11 = scalar_lea.vmem %s1383_s10, 1024  ;;  %p1385_p11 = scmp.lt.s32.totalorder %s1574_s15, %s1383_s10 }
  0x26   : > { %p1380_p2 = pnand %p1378_p0, %p1364_p1  ;;  %p1386_p4 = scmp.lt.s32.totalorder %s1384_s11, %s1377_s8 }
  0x28   : > { %p1381_p12 = pneg %p1380_p2  ;;  %p1387_p5 = por %p1386_p4, %p1385_p11 }
  0x2a   : > { %p1388_p7 = pnand %p1387_p5, %p1381_p12 }
  0x2c   : > { %1391 = shalt.err (!%p1388_p7)
}
  0x2d   : > { %s1461_s12 = smov 128   ;;  %s1462_s14 = smov 8  }
  0x2e   : > { %1305 = dma.hbm_to_vmem [thread:$0]  (!%p1570_p13), %s1566_s13, 512, %s1574_s15, %s1576_s17, %s1461_s12, %s1461_s12, %s1462_s14  }
  0x2f   : > { %p1042_p9 = scmp.ge.s32.totalorder %s1458_s23, 1  ;;  %p209_p1 = scmp.lt.s32.totalorder %s1458_s23, 3 }
  0x31   : > { %p210_p3 = pnand %p1042_p9, %p209_p1 }
  0x32   : > { %s1607_s18 = sand.u32 (!%p210_p3), 1, %s1450_s21  }
  0x33   : > { %213 = sbr.rel (%p210_p3) target bundleno = 1567 (0x61f), region = 40  ;;  %s1043_s19 = sshll.u32 (!%p210_p3), %s1607_s18, 5 }
  0x34   : > { %s216_s24 = scalar_lea.sflag (!%p210_p3), [#allocation4], %s1607_s18  ;;  %s1611_s26 = scalar_lea.vmem (!%p210_p3), [#allocation3], %s1043_s19 }
  0x3a   : > { %1437 = dma.done.wait (%p1546_p6), %s216_s24, 512  }
  0x3b   : > { %1439 = vsyncadd (%p1546_p6), %s216_s24, 4294966784  ;;  %v1463_v1 = vmov 0   ;;  %v1354_v2 = vld [vmem:[%s1611_s26 + $0x4] ss:$8 sps:$4 sm:$0xff]   ;;  %v1356_v3 = vld [vmem:[%s1611_s26] ss:$8 sps:$4 sm:$0xff]   ;;  %v255_v15 = vlaneseq }
  0x3c   : > { %447 = vmatprep.mubr.bf16.mxu0 %v1463_v1  ;;  %1352 = vset.pattern.permute.xlu0 %v1463_v1  ;;  %v1625_v4 = vld [vmem:[%s2025_s1] sm:$0xff]   ;;  %vm2034_vm0 = vcmask 130048   ;;  %v1636_v6 = vld [vmem:[%s2025_s1 + $0x8] ss:$0 sps:$4 sm:$0xff]   ;;  %s1464_s29 = smov 1   ;;  %s1465_s8 = smov 127  }
  0x3d   : > { %1353 = vset.pattern.permute.xlu1 %v1463_v1  ;;  %415 = vmatprep.subr.bf16.mxu0 %v1354_v2  ;;  %v252_v5 = vld [vmem:[%s2026_s2] sm:$0xff]  ;;  %v1646_v17 = vand.u32 127, %v255_v15  ;;  %v1466_v27 = vmov 0.0   ;;  %v1679_v38 = vshrl.u32 %v255_v15, 7  ;;  %v1467_v49 = vmov 1.0|1.0  }
  0x3e   : > { %416 = vmatpush1.bf16.msra.mxu0 %v1356_v3  ;;  %502 = vperm.xlu0 %1352, %v252_v5   ;;  %v2056_v63 = vmov 0  ;;  %v2058_v0 = vmov 0  ;;  %s1044_s11 = sshll.u32 %s1607_s18, 1  ;;  %s1163_s19 = sshll.u32 %s1524_s4, 5 }
  0x3f   : > { %vm2033_vm1 = vcmp.lt.s32.totalorder %v1646_v17, 1  ;;  %vm2032_vm2 = vcmp.eq.s32.totalorder %v1646_v17, 0  ;;  %v1653_v21 = vadd.s32 128, %v1646_v17  ;;  %vm2035_vm3 = vcmp.lt.s32.totalorder %v1646_v17, 127  ;;  %585 = vmatprep.mubr.f32.mxu1 %v1466_v27  ;;  %s245_s12 = scalar_lea.vmem [#allocation6], %s1044_s11  ;;  %s1979_s13 = scalar_lea.hbm %s2029_s5, %s1163_s19 }
  0x40   : > { %v1685_v39 = vmul.u32 2, %v1646_v17  ;;  %v272_v40 = vadd.s32 128, %v1679_v38  ;;  %v273_v41 = vadd.s32 136, %v1679_v38  ;;  %v257_v42 = vadd.s32 8, %v1679_v38  ;;  %s962_s14 = sshll.u32 %s245_s12, 4  ;;  %s949_s15 = scalar_lea.sflag [#allocation5], %s1607_s18  ;;  %s1974_s14 = int_to_ptr.vmem [resolvable:$true] %s962_s14 }
  0x41   : > { %1081 = vmatmul.mubr.msk.bf16.vlgmr.msra.gmra.mrb[0].mxu0 %vm2034_vm0, %v1625_v4  ;;  %vm2031_vm4 = vcmp.eq.s32.totalorder %v1653_v21, 255  ;;  %v274_v43 = vadd.s32 144, %v1679_v38  ;;  %v275_v44 = vadd.s32 152, %v1679_v38  ;;  %v258_v45 = vadd.s32 16, %v1679_v38  ;;  %s1392_s30 = scalar_lea.vmem %s1974_s14, 32  ;;  %p2094_p11 = scmp.ne.s32.totalorder %s2043_s6, 0 }
  0x42   : > { %457 = vmatprep.mubr.bf16.mxu0 %v1463_v1  ;;  %vm291_vm5 = vcmp.eq.s32.totalorder %v1679_v38, %v1685_v39  ;;  %vm307_vm6 = vcmp.eq.s32.totalorder %v272_v40, %v1685_v39  ;;  %vm308_vm7 = vcmp.eq.s32.totalorder %v273_v41, %v1685_v39  ;;  %vm292_vm8 = vcmp.eq.s32.totalorder %v257_v42, %v1685_v39  ;;  %v1361_v40 = vld [vmem:[%s1611_s26 + $0x14] ss:$8 sps:$4 sm:$0xff]   ;;  %v1359_v42 = vld [vmem:[%s1611_s26 + $0x10] ss:$8 sps:$4 sm:$0xff]   ;;  %p1393_p6 = scmp.ne.s32.totalorder %s1974_s14, %s1392_s30  ;;  %s1468_s4 = smov [#allocation6]  }
  0x43   : > { %v259_v46 = vadd.s32 24, %v1679_v38  ;;  %vm1699_vm9 = vmpackc.low %vm308_vm7, %vm307_vm6  ;;  %vm309_vm10 = vcmp.eq.s32.totalorder %v274_v43, %v1685_v39  ;;  %vm310_vm11 = vcmp.eq.s32.totalorder %v275_v44, %v1685_v39  ;;  %vm293_vm12 = vcmp.eq.s32.totalorder %v258_v45, %v1685_v39  ;;  %v1869_v41 = vld [vmem:[%s2027_s3] sm:$0x7]  ;;  %s1396_s16 = sshll.u32 %s1468_s4, 4  ;;  %s1397_s16 = int_to_ptr.vmem [resolvable:$false] %s1396_s16 }
  0x44   : > { %v276_v48 = vadd.s32 160, %v1679_v38  ;;  %1235 = vmatprep.subr.msk.bf16.mxu0 %vm1699_vm9, %v1467_v49  ;;  %vm1713_vm13 = vmpackc.low %vm292_vm8, %vm291_vm5  ;;  %v277_v51 = vadd.s32 168, %v1679_v38  ;;  %v260_v52 = vadd.s32 32, %v1679_v38  ;;  %v261_v53 = vadd.s32 40, %v1679_v38  ;;  %p1394_p12 = pnand %p1393_p6, %p2094_p11  ;;  %s1398_s17 = scalar_lea.vmem %s1397_s16, 64 }
  0x45   : > { %vm294_vm14 = vcmp.eq.s32.totalorder %v259_v46, %v1685_v39  ;;  %1237 = vmatpush3.bf16.msk.msra.mxu0 %vm1713_vm13, %v1467_v49  ;;  %vm1724_vm15 = vmpackc.low %vm310_vm11, %vm309_vm10  ;;  %v278_v55 = vadd.s32 176, %v1679_v38  ;;  %v279_v56 = vadd.s32 184, %v1679_v38  ;;  %v262_v59 = vadd.s32 48, %v1679_v38  ;;  %p1399_p8 = scmp.lt.s32.totalorder %s1974_s14, %s1397_s16  ;;  %p1400_p10 = scmp.lt.s32.totalorder %s1398_s17, %s1392_s30 }
  0x46   : > { %vm311_vm5 = vcmp.eq.s32.totalorder %v276_v48, %v1685_v39  ;;  %1239 = vmatprep.subr.msk.bf16.mxu0 %vm1724_vm15, %v1467_v49  ;;  %vm1736_vm6 = vmpackc.low %vm294_vm14, %vm293_vm12  ;;  %vm312_vm7 = vcmp.eq.s32.totalorder %v277_v51, %v1685_v39  ;;  %vm295_vm10 = vcmp.eq.s32.totalorder %v260_v52, %v1685_v39  ;;  %vm296_vm11 = vcmp.eq.s32.totalorder %v261_v53, %v1685_v39  ;;  %p1395_p13 = pneg %p1394_p12 }
  0x47   : > { %vm1741_vm8 = vmpackc.low %vm312_vm7, %vm311_vm5  ;;  %v263_v60 = vadd.s32 56, %v1679_v38  ;;  %vm314_vm12 = vcmp.eq.s32.totalorder %v279_v56, %v1685_v39  ;;  %v280_v61 = vadd.s32 192, %v1679_v38  ;;  %v281_v62 = vadd.s32 200, %v1679_v38  ;;  %p1401_p0 = por %p1400_p10, %p1399_p8 }
  0x48   : > { %vm1759_vm14 = vmpackc.low %vm296_vm11, %vm295_vm10  ;;  %vm297_vm7 = vcmp.eq.s32.totalorder %v262_v59, %v1685_v39  ;;  %v264_v2 = vadd.s32 64, %v1679_v38  ;;  %v265_v3 = vadd.s32 72, %v1679_v38  ;;  %v282_v5 = vadd.s32 208, %v1679_v38 }
  0x49   : > { %1082 = vmatmul.mubr.msk.bf16.gmra.mrb[4].mxu0 %vm2034_vm0, %v1636_v6  ;;  %v2057_v63 = vsel %vm1759_vm14, 4294967295, %v2056_v63  ;;  %vm316_vm0 = vcmp.eq.s32.totalorder %v281_v62, %v1685_v39  ;;  %v687_v15 = vsub.s32 0, %v1679_v38  ;;  %p1402_p2 = pnand %p1401_p0, %p1395_p13 }
  0x4a   : > { %1241 = vmatpush3.bf16.msk.msra.mxu0 %vm1736_vm6, %v1467_v49  ;;  %vm299_vm11 = vcmp.eq.s32.totalorder %v264_v2, %v1685_v39 }
  0x4b   : > { %1243 = vmatprep.subr.msk.bf16.mxu0 %vm1741_vm8, %v1467_v49 }
  0x4e   : > { %1245 = vmatpush3.bf16.msk.msra.mxu0 %vm1759_vm14, %v1467_v49 }
  0xbd   : > { %v1644_v16 = vpop.permute.xlu0 %502 }
 0x114   : > { %v449_v7 = vpop.f32.mrb[0].mxu0 }
 0x115   : > { %468 = vrot.lane.b32.xlu0 %v449_v7, %s1464_s29  ;;  %v451_v8 = vpop.f32.mrb[1].mxu0  ;;  %v283_v7 = vadd.s32 216, %v1679_v38 }
 0x116   : > { %470 = vrot.lane.b32.xlu1 %v451_v8, %s1464_s29  ;;  %v453_v9 = vpop.f32.mrb[2].mxu0  ;;  %v2060_v8 = vmov 0 }
 0x117   : > { %v455_v10 = vpop.f32.mrb[3].mxu0 }
 0x11c   : > { %v459_v11 = vpop.f32.mrb[4].mxu0 }
 0x11d   : > { %485 = vrot.lane.b32.xlu1 %v459_v11, %s1465_s8  ;;  %v461_v12 = vpop.f32.mrb[5].mxu0  ;;  %v267_v11 = vadd.s32 88, %v1679_v38 }
 0x11e   : > { %487 = vrot.lane.b32.xlu0 %v461_v12, %s1465_s8  ;;  %v463_v13 = vpop.f32.mrb[6].mxu0  ;;  %v284_v12 = vadd.s32 224, %v1679_v38 }
 0x11f   : > { %v464_v14 = vpop.f32.mrb[7].mxu0  ;;  %v285_v13 = vadd.s32 232, %v1679_v38 }
 0x120   : > { %v2064_v14 = vmov 0 }
 0x187   : > { %v469_v18 = vpop.permute.xlu0 %468 }
 0x188   : > { %v471_v19 = vpop.permute.xlu1 %470 }
 0x189   : > { %v474_v20 = vsel %vm2033_vm1, %v471_v19, %v469_v18  ;;  %v473_v23 = vsel %vm2033_vm1, %v469_v18, %v471_v19  ;;  %vm315_vm1 = vcmp.eq.s32.totalorder %v280_v61, %v1685_v39  ;;  %v268_v18 = vadd.s32 96, %v1679_v38 }
 0x18a   : > { %v479_v22 = vsel %vm2032_vm2, 0.0, %v474_v20  ;;  %v482_v28 = vadd.f32 %v473_v23, %v455_v10  ;;  %vm298_vm2 = vcmp.eq.s32.totalorder %v263_v60, %v1685_v39  ;;  %vm1785_vm10 = vmpackc.low %vm316_vm0, %vm315_vm1  ;;  %v266_v10 = vadd.s32 80, %v1679_v38 }
 0x18b   : > { %v481_v25 = vadd.f32 %v479_v22, %v453_v9  ;;  %v2062_v9 = vmov 0  ;;  %v269_v19 = vadd.s32 104, %v1679_v38  ;;  %v286_v20 = vadd.s32 240, %v1679_v38 }
 0x18c   : > { %v2063_v9 = vsel %vm1785_vm10, 4294967295, %v2062_v9  ;;  %v287_v22 = vadd.s32 248, %v1679_v38 }
 0x18d   : > { %vm321_vm14 = vcmp.eq.s32.totalorder %v286_v20, %v1685_v39 }
 0x18f   : > { %v486_v24 = vpop.permute.xlu1 %485 }
 0x190   : > { %v488_v26 = vpop.permute.xlu0 %487 }
 0x191   : > { %v490_v29 = vsel %vm2035_vm3, %v486_v24, %v488_v26  ;;  %v491_v30 = vsel %vm2035_vm3, %v488_v26, %v486_v24  ;;  %vm317_vm3 = vcmp.eq.s32.totalorder %v282_v5, %v1685_v39 }
 0x192   : > { %v497_v31 = vsel %vm2031_vm4, 0.0, %v491_v30  ;;  %v498_v32 = vadd.f32 %v490_v29, %v481_v25  ;;  %vm313_vm4 = vcmp.eq.s32.totalorder %v278_v55, %v1685_v39 }
 0x193   : > { %v499_v33 = vadd.f32 %v497_v31, %v482_v28  ;;  %vm1763_vm5 = vmpackc.low %vm314_vm12, %vm313_vm4  ;;  %vm300_vm12 = vcmp.eq.s32.totalorder %v265_v3, %v1685_v39 }
 0x194   : > { %v1669_v34 = vadd.f32 %v1644_v16, %v498_v32  ;;  %v2059_v0 = vsel %vm1763_vm5, 4294967295, %v2058_v0  ;;  %1247 = vmatprep.subr.msk.bf16.mxu0 %vm1763_vm5, %v1467_v49  ;;  %vm1781_vm4 = vmpackc.low %vm298_vm2, %vm297_vm7  ;;  %vm318_vm5 = vcmp.eq.s32.totalorder %v283_v7, %v1685_v39  ;;  %vm301_vm2 = vcmp.eq.s32.totalorder %v266_v10, %v1685_v39 }
 0x195   : > { %v1672_v35 = vadd.f32 %v1644_v16, %v499_v33  ;;  %v2061_v8 = vsel %vm1781_vm4, 4294967295, %v2060_v8  ;;  %1249 = vmatpush3.bf16.msk.msra.mxu0 %vm1781_vm4, %v1467_v49  ;;  %vm1803_vm0 = vmpackc.low %vm300_vm12, %vm299_vm11  ;;  %vm302_vm7 = vcmp.eq.s32.totalorder %v267_v11, %v1685_v39  ;;  %vm319_vm4 = vcmp.eq.s32.totalorder %v284_v12, %v1685_v39 }
 0x196   : > { %v507_v36 = vmax.f32 %v1669_v34, 0.0  ;;  %1251 = vmatprep.subr.msk.bf16.mxu0 %vm1785_vm10, %v1467_v49  ;;  %v2065_v14 = vsel %vm1803_vm0, 4294967295, %v2064_v14  ;;  %vm1807_vm1 = vmpackc.low %vm318_vm5, %vm317_vm3  ;;  %vm320_vm10 = vcmp.eq.s32.totalorder %v285_v13, %v1685_v39  ;;  %vm303_vm11 = vcmp.eq.s32.totalorder %v268_v18, %v1685_v39 }
 0x197   : > { %v508_v37 = vmax.f32 %v1672_v35, 0.0  ;;  %vm1825_vm3 = vmpackc.low %vm302_vm7, %vm301_vm2  ;;  %vm304_vm12 = vcmp.eq.s32.totalorder %v269_v19, %v1685_v39  ;;  %vm2076_vm2 = vcmp.lt.s32.totalorder %v1646_v17, 127 }
 0x198   : > { %509 = vrot.lane.b32.xlu1 %v507_v36, %s1465_s8  ;;  %vm1829_vm5 = vmpackc.low %vm320_vm10, %vm319_vm4 }
 0x199   : > { %511 = vrot.lane.b32.xlu0 %v508_v37, %s1465_s8  ;;  %1253 = vmatpush3.bf16.msk.msra.mxu0 %vm1803_vm0, %v1467_v49  ;;  %vm322_vm0 = vcmp.eq.s32.totalorder %v287_v22, %v1685_v39  ;;  %vm1843_vm4 = vmpackc.low %vm304_vm12, %vm303_vm11  ;;  %vm2080_vm11 = vnez %v2057_v63 }
 0x19a   : > { %1255 = vmatprep.subr.msk.bf16.mxu0 %vm1807_vm1, %v1467_v49  ;;  %vm1847_vm10 = vmpackc.low %vm322_vm0, %vm321_vm14  ;;  %vm517_vm14 = vcmask 64512   ;;  %vm2078_vm0 = vcmask 130048  }
 0x19b   : > { %vm2077_vm7 = vmmov %vm2076_vm2 }
 0x19d   : > { %1257 = vmatpush3.bf16.msk.msra.mxu0 %vm1825_vm3, %v1467_v49 }
 0x19e   : > { %1259 = vmatprep.subr.msk.bf16.mxu0 %vm1829_vm5, %v1467_v49 }
 0x1a1   : > { %1261 = vmatpush3.bf16.msk.msra.mxu0 %vm1843_vm4, %v1467_v49 }
 0x1a2   : > { %1263 = vmatprep.subr.msk.bf16.mxu0 %vm1847_vm10, %v1467_v49 }
 0x20a   : > { %v510_v28 = vpop.permute.xlu1 %509 }
 0x20b   : > { %v512_v29 = vpop.permute.xlu0 %511 }
 0x20c   : > { %v513_v30 = vsel %vm2076_vm2, %v510_v28, %v512_v29  ;;  %v514_v31 = vsel %vm2077_vm7, %v512_v29, %v510_v28  ;;  %vm2088_vm7 = vmmov %vm2076_vm2 }
 0x20d   : > { %v516_v32 = vmax.f32 %v508_v37, %v514_v31  ;;  %v515_v33 = vmax.f32 %v507_v36, %v513_v30 }
 0x20f   : > { %521 = vmatprep.subr.mxu1 %v516_v32 }
 0x210   : > { %522 = vmatpush1.msra.mxu1 %v515_v33 }
 0x211   : > { %1083 = vmatmul.mubr.msk.f32.vlgmr.msra.gmra.mrb[0].mxu1 %vm517_vm14, %v1869_v41  ;;  %704 = vmatprep.subr.bf16.mxu1 %v1361_v40 }
 0x212   : > { %705 = vmatpush1.bf16.msra.mxu1 %v1359_v42  ;;  %736 = vmatprep.mubr.bf16.mxu1 %v1463_v1 }
 0x213   : > { %1267 = vmatprep.subr.msk.bf16.mxu1 %vm1699_vm9, %v1467_v49  ;;  %vm2079_vm9 = vmmov %vm2078_vm0 }
 0x215   : > { %1120 = vmatmul.mubr.msk.bf16.vlgmr.msra.gmra.mrb[4].mxu1 %vm2078_vm0, %v1625_v4  ;;  %v271_v4 = vadd.s32 120, %v1679_v38  ;;  %vm2089_vm0 = vcmp.eq.s32.totalorder %v1653_v21, 255 }
 0x216   : > { %746 = vmatprep.mubr.bf16.mxu1 %v1463_v1  ;;  %1269 = vmatpush3.bf16.msk.msra.mxu1 %vm1713_vm13, %v1467_v49  ;;  %vm2081_vm13 = vnez %v2059_v0  ;;  %v270_v1 = vadd.s32 112, %v1679_v38  ;;  %v254_v0 = vld [vmem:[#allocation2] sm:$0x1] }
 0x217   : > { %1271 = vmatprep.subr.msk.bf16.mxu1 %vm1724_vm15, %v1467_v49  ;;  %vm2082_vm15 = vnez %v2061_v8 }
 0x21a   : > { %1273 = vmatpush3.bf16.msk.msra.mxu1 %vm1736_vm6, %v1467_v49  ;;  %vm2083_vm6 = vnez %v2063_v9 }
 0x21b   : > { %1275 = vmatprep.subr.msk.bf16.mxu1 %vm1741_vm8, %v1467_v49  ;;  %vm2084_vm8 = vnez %v2065_v14 }
 0x21d   : > { %1121 = vmatmul.mubr.msk.bf16.gmra.mrb[8].mxu1 %vm2079_vm9, %v1636_v6  ;;  %vm2090_vm9 = vmmov %vm2076_vm2 }
 0x21e   : > { %1277 = vmatpush3.bf16.msk.msra.mxu1 %vm2080_vm11, %v1467_v49  ;;  %vm2091_vm11 = vmmov %vm2076_vm2 }
 0x21f   : > { %1279 = vmatprep.subr.msk.bf16.mxu1 %vm2081_vm13, %v1467_v49 }
 0x222   : > { %1281 = vmatpush3.bf16.msk.msra.mxu1 %vm2082_vm15, %v1467_v49  ;;  %vm669_vm15 = vcmp.eq.s32.totalorder %v1646_v17, 127 }
 0x223   : > { %1283 = vmatprep.subr.msk.bf16.mxu1 %vm2083_vm6, %v1467_v49 }
 0x226   : > { %1285 = vmatpush3.bf16.msk.msra.mxu1 %vm2084_vm8, %v1467_v49 }
 0x227   : > { %1287 = vmatprep.subr.msk.bf16.mxu1 %vm1807_vm1, %v1467_v49  ;;  %vm305_vm1 = vcmp.eq.s32.totalorder %v270_v1, %v1685_v39 }
 0x22a   : > { %1289 = vmatpush3.bf16.msk.msra.mxu1 %vm1825_vm3, %v1467_v49  ;;  %vm306_vm3 = vcmp.eq.s32.totalorder %v271_v4, %v1685_v39 }
 0x22b   : > { %1291 = vmatprep.subr.msk.bf16.mxu1 %vm1829_vm5, %v1467_v49  ;;  %vm1264_vm12 = vmpackc.low %vm306_vm3, %vm305_vm1  ;;  %vm2085_vm5 = vcmp.lt.s32.totalorder %v1646_v17, 1 }
 0x22c   : > { %1265 = vmatpush3.bf16.msk.msra.mxu0 %vm1264_vm12, %v1467_v49 }
 0x22e   : > { %1293 = vmatpush3.bf16.msk.msra.mxu1 %vm1843_vm4, %v1467_v49  ;;  %vm2086_vm4 = vcmp.eq.s32.totalorder %v1646_v17, 0 }
 0x22f   : > { %1295 = vmatprep.subr.msk.bf16.mxu1 %vm1847_vm10, %v1467_v49  ;;  %vm2087_vm10 = vmmov %vm2085_vm5 }
 0x230   : > { %vm2092_vm13 = vmmov %vm2086_vm4 }
 0x232   : > { %1297 = vmatpush3.bf16.msk.msra.mxu1 %vm1264_vm12, %v1467_v49 }
 0x2e4   : > { %v587_v6 = vpop.f32.mrb[0].mxu1 }
 0x2e5   : > { %v589_v34 = vpop.f32.mrb[1].mxu1 }
 0x2e6   : > { %656 = vmatprep.mubr.f32.mxu0 %v589_v34 }
 0x2e7   : > { %657 = vmatmul.mubr.f32.vlgmr.msra.gmra.mrb[8].mxu0 %v587_v6 }
 0x2e8   : > { %v738_v35 = vpop.f32.mrb[4].mxu1  ;;  %851 = vmatprep.mubr.f32.mxu0 %v1466_v27 }
 0x2e9   : > { %755 = vrot.lane.b32.xlu1 %v738_v35, %s1464_s29  ;;  %v740_v36 = vpop.f32.mrb[5].mxu1 }
 0x2ea   : > { %757 = vrot.lane.b32.xlu0 %v740_v36, %s1464_s29  ;;  %v742_v37 = vpop.f32.mrb[6].mxu1 }
 0x2eb   : > { %v744_v43 = vpop.f32.mrb[7].mxu1 }
 0x2f0   : > { %v748_v39 = vpop.f32.mrb[8].mxu1 }
 0x2f1   : > { %765 = vrot.lane.b32.xlu1 %v748_v39, %s1465_s8  ;;  %v750_v44 = vpop.f32.mrb[9].mxu1 }
 0x2f2   : > { %767 = vrot.lane.b32.xlu0 %v750_v44, %s1465_s8  ;;  %v752_v45 = vpop.f32.mrb[10].mxu1 }
 0x2f3   : > { %v753_v46 = vpop.f32.mrb[11].mxu1 }
 0x35b   : > { %v756_v47 = vpop.permute.xlu1 %755 }
 0x35c   : > { %v758_v48 = vpop.permute.xlu0 %757 }
 0x35d   : > { %v760_v27 = vsel %vm2085_vm5, %v758_v48, %v756_v47  ;;  %v759_v50 = vsel %vm2087_vm10, %v756_v47, %v758_v48 }
 0x35e   : > { %v761_v49 = vsel %vm2086_vm4, 0.0, %v760_v27  ;;  %v764_v54 = vadd.f32 %v759_v50, %v744_v43 }
 0x35f   : > { %v763_v52 = vadd.f32 %v761_v49, %v742_v37 }
 0x363   : > { %v766_v51 = vpop.permute.xlu1 %765 }
 0x364   : > { %v768_v53 = vpop.permute.xlu0 %767 }
 0x365   : > { %v769_v55 = vsel %vm2076_vm2, %v766_v51, %v768_v53  ;;  %v770_v56 = vsel %vm2088_vm7, %v768_v53, %v766_v51 }
 0x366   : > { %v772_v57 = vsel %vm2089_vm0, 0.0, %v770_v56  ;;  %v773_v58 = vadd.f32 %v769_v55, %v763_v52 }
 0x367   : > { %v774_v59 = vadd.f32 %v772_v57, %v764_v54 }
 0x368   : > { %v775_v60 = vadd.f32 %v773_v58, %v1644_v16 }
 0x369   : > { %v776_v61 = vadd.f32 %v774_v59, %v1644_v16 }
 0x36a   : > { %v777_v62 = vmax.f32 %v775_v60, 0.0 }
 0x36b   : > { %v778_v63 = vmax.f32 %v776_v61, 0.0 }
 0x36c   : > { %779 = vrot.lane.b32.xlu1 %v777_v62, %s1465_s8 }
 0x36d   : > { %781 = vrot.lane.b32.xlu0 %v778_v63, %s1465_s8 }
 0x370   : > { %682 = vperm.xlu1 %1353, %v254_v0  }
 0x3ba   : > { %v1196_v2 = vpop.f32.mrb[8].mxu0 }
 0x3bb   : > { %v1197_v3 = vpop.f32.mrb[9].mxu0 }
 0x3bc   : > { %v1198_v5 = vadd.f32 %v1197_v3, %v1196_v2 }
 0x3be   : > { %662 = vrot.lane.b32.xlu0 %v1198_v5, %s1464_s29  ;;  %v671_v21 = vrot.slane %v1198_v5, 2 }
 0x3c2   : > { %673 = vrot.lane.b32.xlu0 %v671_v21, %s1465_s8 }
 0x3de   : > { %v780_v7 = vpop.permute.xlu1 %779 }
 0x3df   : > { %v782_v8 = vpop.permute.xlu0 %781 }
 0x3e0   : > { %v783_v16 = vsel %vm2090_vm9, %v780_v7, %v782_v8  ;;  %v784_v9 = vsel %vm2091_vm11, %v782_v8, %v780_v7 }
 0x3e1   : > { %v785_v10 = vmax.f32 %v777_v62, %v783_v16  ;;  %v786_v11 = vmax.f32 %v778_v63, %v784_v9 }
 0x3e3   : > { %787 = vmatprep.subr.mxu0 %v786_v11 }
 0x3e4   : > { %788 = vmatpush1.msra.mxu0 %v785_v10 }
 0x3e5   : > { %1122 = vmatmul.mubr.msk.f32.vlgmr.msra.gmra.mrb[10].mxu0 %vm517_vm14, %v1869_v41  ;;  %vm2093_vm14 = vmmov %vm2086_vm4 }
 0x3ef   : > { %v683_v18 = vpop.permute.xlu1 %682 }
 0x3f0   : > { %v688_v24 = vrot.slane %v683_v18, %v687_v15 }
 0x430   : > { %v663_v12 = vpop.permute.xlu0 %662 }
 0x431   : > { %v664_v13 = vsel %vm2092_vm13, 0.0, %v663_v12 }
 0x432   : > { %v666_v14 = vrot.slane %v664_v13, 7 }
 0x434   : > { %v674_v19 = vpop.permute.xlu0 %673  ;;  %v668_v22 = vadd.f32 %v1198_v5, %v666_v14 }
 0x435   : > { %v675_v20 = vsel %vm669_vm15, 0.0, %v674_v19 }
 0x436   : > { %v677_v23 = vrot.slane %v675_v20, 7 }
 0x438   : > { %v679_v25 = vadd.f32 %v677_v23, %v668_v22 }
 0x43a   : > { %v689_v26 = vadd.f32 %v688_v24, %v679_v25 }
 0x43c   : > { %690 = vst [vmem:[%s245_s12 - $0x1] sm:$0x2] %v689_v26 }
 0x4b8   : > { %v853_v28 = vpop.f32.mrb[10].mxu0 }
 0x4b9   : > { %v855_v29 = vpop.f32.mrb[11].mxu0 }
 0x4ba   : > { %922 = vmatprep.mubr.f32.mxu1 %v855_v29 }
 0x4bb   : > { %923 = vmatmul.mubr.f32.vlgmr.msra.gmra.mrb[2].mxu1 %v853_v28 }
 0x58e   : > { %v1231_v30 = vpop.f32.mrb[2].mxu1 }
 0x58f   : > { %v1232_v38 = vpop.f32.mrb[3].mxu1 }
 0x590   : > { %v1233_v31 = vadd.f32 %v1232_v38, %v1231_v30 }
 0x592   : > { %928 = vrot.lane.b32.xlu1 %v1233_v31, %s1464_s29  ;;  %v936_v32 = vrot.slane %v1233_v31, 2 }
 0x596   : > { %938 = vrot.lane.b32.xlu1 %v936_v32, %s1465_s8 }
 0x604   : > { %v929_v33 = vpop.permute.xlu1 %928 }
 0x605   : > { %v930_v40 = vsel %vm2093_vm14, 0.0, %v929_v33 }
 0x606   : > { %v932_v41 = vrot.slane %v930_v40, 7 }
 0x608   : > { %v939_v42 = vpop.permute.xlu1 %938  ;;  %v934_v4 = vadd.f32 %v1233_v31, %v932_v41 }
 0x609   : > { %v940_v1 = vsel %vm669_vm15, 0.0, %v939_v42 }
 0x60a   : > { %v942_v6 = vrot.slane %v940_v1, 7 }
 0x60c   : > { %v944_v34 = vadd.f32 %v942_v6, %v934_v4 }
 0x60e   : > { %v945_v35 = vadd.f32 %v944_v34, %v688_v24 }
 0x610   : > { %1155 = vst [vmem:[%s245_s12] sm:$0x2] %v945_v35 }
 0x611   : > { %1405 = shalt.err (!%p1402_p2)
}
 0x612   : > { %s1406_s27 = scalar_lea.hbm %s1979_s13, 32  ;;  %s1410_s10 = scalar_lea.hbm %s2029_s5, 64 }
 0x613   : > { %p1407_p4 = scmp.ne.s32.totalorder %s1979_s13, %s1406_s27  ;;  %p1411_p9 = scmp.lt.u32.totalorder %s1979_s13, %s2029_s5 }
 0x614   : > { %p1412_p1 = scmp.lt.u32.totalorder %s1410_s10, %s1406_s27  ;;  %p1414_p6 = scmp.lt.u32.totalorder %s1406_s27, %s1979_s13 }
 0x615   : > { %p1408_p5 = pnand %p1407_p4, %p2094_p11 }
 0x616   : > { %p1413_p3 = por %p1412_p1, %p1411_p9 }
 0x617   : > { %p1409_p7 = pneg %p1408_p5 }
 0x618   : > { %p1415_p12 = por %p1414_p6, %p1413_p3 }
 0x61a   : > { %p1416_p13 = pnand %p1415_p12, %p1409_p7 }
 0x61c   : > { %1419 = shalt.err (!%p1416_p13)
}
 0x61d   : > { %s1469_s19 = smov 16  }
 0x61e   : > { %1300 = dma.vmem_to_hbm [thread:$0]  (%p2094_p11), %s1974_s14, 32, %s1979_s13, %s949_s15, %s1469_s19, %s1469_s19, %s1464_s29  }
 0x61f PF: > { %s977_s24 = sand.u32 1, %s1446_s20   ;;  %p2095_p8 = scmp.ne.s32.totalorder %s2044_s7, 0 }
 0x620   : > { %p2096_p10 = scmp.ge.s32.totalorder %s1458_s23, 2  ;;  %s978_s26 = scalar_lea.sflag [#allocation5], %s977_s24 }
 0x622   : > { %p1307_p0 = pnand %p2096_p10, %p2095_p8 }
 0x624   : > { %1441 = dma.done.wait (!%p1307_p0), %s978_s26, 32  }
 0x625   : > { %1443 = vsyncadd (!%p1307_p0), %s978_s26, 4294967264  ;;  %p20_p2 = scmp.ge.s32.totalorder %s1528_s25, 4   ;;  %s2097_s20 = smov %s1450_s21 }
 0x626   : > { %s2098_s21 = smov %s1454_s22  ;;  %s2099_s22 = smov %s1540_s28 }
 0x627   : > { %s2100_s23 = smov %s1528_s25  ;;  %22 = sbr.rel (!%p20_p2) target bundleno = 8 (0x8), region = 87 }
 0x62e   :  { %983 = vsyncpa [#allocation4], 1 }
 0x62f   :  { %985 = vsyncpa [#allocation4 + $0x1], 1 }
 0x630   :  { %986 = vsyncpa [#allocation5], 1 }
 0x631   :  { %988 = vsyncpa [#allocation5 + $0x1], 1 }

// kernel: tpu_custom_call.1
= control target key start
LH: loop header
LB: loop body
LE: loop exit
PB: predicated region body
PF: predicated region fallthrough
CT: control target
= control target key end

     0   :  { %s2024_s0 = inlined_call_operand.hbm [shape: bf16[4,16,256], index: 0, kind: input, shape index: {}]   ;;  %s2025_s1 = inlined_call_operand.vmem [shape: bf16[24,16], index: 1, kind: input, shape index: {}]   ;;  %s2026_s2 = inlined_call_operand.vmem [shape: f32[8,1], index: 2, kind: input, shape index: {}]   ;;  %s2027_s3 = inlined_call_operand.vmem [shape: f32[3,8], index: 3, kind: input, shape index: {}]   ;;  %s2028_s4 = inlined_call_operand.<no memory space> [shape: f32[1,1], index: 4, kind: input, shape index: {}]   ;;  %s2029_s5 = inlined_call_operand.hbm [shape: f32[4,1,128], index: 5, kind: output, shape index: {}]  }
   0x1   :  { %v10_v0 = vstv %s2028_s4 }
   0x2   :  { %11 = vst [vmem:[#allocation2] sm:$0x1] %v10_v0 }
   0x3   :  { %12 = vsyncpa [#allocation4], 0 }
   0x4   :  { %14 = vsyncpa [#allocation4 + $0x1], 0 }
   0x5   :  { %15 = vsyncpa [#allocation5], 0 }
   0x6   :  { %17 = vsyncpa [#allocation5 + $0x1], 0  ;;  %s1503_s20 = smov 0   ;;  %s1505_s21 = smov 0  }
   0x7   :  { %s1507_s22 = smov 0   ;;  %s1509_s23 = smov 0  }
   0x8 LB: > { %s1524_s4 = sadd.s32 4294967295, %s1458_s23   ;;  %s1035_s24 = sadd.s32 4294967294, %s1458_s23   ;;  %s1458_s23 = sphi %s1509_s23, %s2100_s23   ;;  %s1454_s22 = sphi %s1507_s22, %s2099_s22   ;;  %s1450_s21 = sphi %s1505_s21, %s2098_s21   ;;  %s1446_s20 = sphi %s1503_s20, %s2097_s20  }
   0x9   : > { %s1528_s25 = sadd.s32 1, %s1458_s23   ;;  %s30_s26 = sadd.s32 1, %s1454_s22 }
   0xa   : > { %s27_s27 = ssub.s32 %s1458_s23, %s1528_s25  ;;  %p37_p0 = scmp.ne.s32.totalorder %s1454_s22, %s1450_s21 }
   0xb   : > { %p28_p1 = scmp.eq.s32.totalorder %s27_s27, 0  ;;  %p38_p2 = scmp.eq.s32.totalorder %s1458_s23, 0 }
   0xc   : > { %p43_p3 = scmp.ne.s32.totalorder %s1450_s21, %s1446_s20  ;;  %p44_p4 = scmp.eq.s32.totalorder %s1524_s4, 0 }
   0xd   : > { %s1540_s28 = scalar_select %p28_p1, %s1454_s22, %s30_s26  }
   0xe   : > { %p1542_p5 = por %p38_p2, %p37_p0  ;;  %p1546_p6 = por %p44_p4, %p43_p3 }
   0xf   : > { %p151_p7 = scmp.eq.s32.totalorder %s1524_s4, 1  ;;  %p157_p8 = scmp.eq.s32.totalorder %s1035_s24, 1 }
  0x10   : > { %p1310_p10 = scmp.lt.s32.totalorder %s1458_s23, 2  ;;  %s189_s8 = sand.u32 1, %s1454_s22  }
  0x11   : > { %p1553_p11 = por %p151_p7, %p37_p0  ;;  %p1557_p12 = por %p157_p8, %p43_p3 }
  0x12   : > { %s1162_s9 = sshll.u32 %s1458_s23, 9  ;;  %s1038_s10 = sshll.u32 %s189_s8, 5 }
  0x13   : > { %s2043_s6 = scalar_select %p1553_p11, 1, 0 }
  0x14   : > { %s2044_s7 = scalar_select %p1557_p12, 1, 0 }
  0x15   : > { %s1566_s13 = scalar_lea.hbm %s2024_s0, %s1162_s9  ;;  %s193_s14 = scalar_lea.vmem [#allocation3], %s1038_s10 }
  0x16   : > { %s201_s15 = sshll.u32 %s193_s14, 4  ;;  %p1570_p13 = pnand %p1310_p10, %p1542_p5  ;;  %s1574_s15 = int_to_ptr.vmem [resolvable:$true] %s201_s15 }
  0x17   : > { %s1576_s17 = scalar_lea.sflag [#allocation4], %s189_s8  ;;  %s1362_s18 = scalar_lea.hbm %s1566_s13, 512 }
  0x18   : > { %p1363_p0 = scmp.ne.s32.totalorder %s1566_s13, %s1362_s18  ;;  %p1364_p1 = pneg %p1570_p13 }
  0x19   : > { %s1367_s26 = scalar_lea.hbm %s2024_s0, 1024  ;;  %p1368_p4 = scmp.lt.u32.totalorder %s1566_s13, %s2024_s0 }
  0x1a   : > { %p1365_p2 = pnand %p1364_p1, %p1363_p0  ;;  %p1369_p5 = scmp.lt.u32.totalorder %s1367_s26, %s1362_s18 }
  0x1b   : > { %p1371_p8 = scmp.lt.u32.totalorder %s1362_s18, %s1566_s13 }
  0x1c   : > { %p1366_p3 = pneg %p1365_p2  ;;  %p1370_p7 = por %p1369_p5, %p1368_p4 }
  0x1e   : > { %p1372_p10 = por %p1371_p8, %p1370_p7 }
  0x20   : > { %p1373_p9 = pnand %p1372_p10, %p1366_p3 }
  0x22   : > { %1376 = shalt.err (!%p1373_p9)
}
  0x23   : > { %s1377_s8 = scalar_lea.vmem %s1574_s15, 512  ;;  %s1460_s9 = smov [#allocation3]  }
  0x24   : > { %p1378_p0 = scmp.ne.s32.totalorder %s1574_s15, %s1377_s8  ;;  %s1382_s10 = sshll.u32 %s1460_s9, 4  ;;  %s1383_s10 = int_to_ptr.vmem [resolvable:$false] %s1382_s10 }
  0x25   : > { %s1384_s11 = scalar_lea.vmem %s1383_s10, 1024  ;;  %p1385_p11 = scmp.lt.s32.totalorder %s1574_s15, %s1383_s10 }
  0x26   : > { %p1380_p2 = pnand %p1378_p0, %p1364_p1  ;;  %p1386_p4 = scmp.lt.s32.totalorder %s1384_s11, %s1377_s8 }
  0x28   : > { %p1381_p12 = pneg %p1380_p2  ;;  %p1387_p5 = por %p1386_p4, %p1385_p11 }
  0x2a   : > { %p1388_p7 = pnand %p1387_p5, %p1381_p12 }
  0x2c   : > { %1391 = shalt.err (!%p1388_p7)
}
  0x2d   : > { %s1461_s12 = smov 128   ;;  %s1462_s14 = smov 8  }
  0x2e   : > { %1305 = dma.hbm_to_vmem [thread:$0]  (!%p1570_p13), %s1566_s13, 512, %s1574_s15, %s1576_s17, %s1461_s12, %s1461_s12, %s1462_s14  }
  0x2f   : > { %p1042_p9 = scmp.ge.s32.totalorder %s1458_s23, 1  ;;  %p209_p1 = scmp.lt.s32.totalorder %s1458_s23, 3 }
  0x31   : > { %p210_p3 = pnand %p1042_p9, %p209_p1 }
  0x32   : > { %s1607_s18 = sand.u32 (!%p210_p3), 1, %s1450_s21  }
  0x33   : > { %213 = sbr.rel (%p210_p3) target bundleno = 1567 (0x61f), region = 40  ;;  %s1043_s19 = sshll.u32 (!%p210_p3), %s1607_s18, 5 }
  0x34   : > { %s216_s24 = scalar_lea.sflag (!%p210_p3), [#allocation4], %s1607_s18  ;;  %s1611_s26 = scalar_lea.vmem (!%p210_p3), [#allocation3], %s1043_s19 }
  0x3a   : > { %1437 = dma.done.wait (%p1546_p6), %s216_s24, 512  }
  0x3b   : > { %1439 = vsyncadd (%p1546_p6), %s216_s24, 4294966784  ;;  %v1463_v1 = vmov 0   ;;  %v1354_v2 = vld [vmem:[%s1611_s26 + $0x4] ss:$8 sps:$4 sm:$0xff]   ;;  %v1356_v3 = vld [vmem:[%s1611_s26] ss:$8 sps:$4 sm:$0xff]   ;;  %v255_v15 = vlaneseq }
  0x3c   : > { %447 = vmatprep.mubr.bf16.mxu0 %v1463_v1  ;;  %1352 = vset.pattern.permute.xlu0 %v1463_v1  ;;  %v1625_v4 = vld [vmem:[%s2025_s1] sm:$0xff]   ;;  %vm2034_vm0 = vcmask 130048   ;;  %v1636_v6 = vld [vmem:[%s2025_s1 + $0x8] ss:$0 sps:$4 sm:$0xff]   ;;  %s1464_s29 = smov 1   ;;  %s1465_s8 = smov 127  }
  0x3d   : > { %1353 = vset.pattern.permute.xlu1 %v1463_v1  ;;  %415 = vmatprep.subr.bf16.mxu0 %v1354_v2  ;;  %v252_v5 = vld [vmem:[%s2026_s2] sm:$0xff]  ;;  %v1646_v17 = vand.u32 127, %v255_v15  ;;  %v1466_v27 = vmov 0.0   ;;  %v1679_v38 = vshrl.u32 %v255_v15, 7  ;;  %v1467_v49 = vmov 1.0|1.0  }
  0x3e   : > { %416 = vmatpush1.bf16.msra.mxu0 %v1356_v3  ;;  %502 = vperm.xlu0 %1352, %v252_v5   ;;  %v2056_v63 = vmov 0  ;;  %v2058_v0 = vmov 0  ;;  %s1044_s11 = sshll.u32 %s1607_s18, 1  ;;  %s1163_s19 = sshll.u32 %s1524_s4, 5 }
  0x3f   : > { %vm2033_vm1 = vcmp.lt.s32.totalorder %v1646_v17, 1  ;;  %vm2032_vm2 = vcmp.eq.s32.totalorder %v1646_v17, 0  ;;  %v1653_v21 = vadd.s32 128, %v1646_v17  ;;  %vm2035_vm3 = vcmp.lt.s32.totalorder %v1646_v17, 127  ;;  %585 = vmatprep.mubr.f32.mxu1 %v1466_v27  ;;  %s245_s12 = scalar_lea.vmem [#allocation6], %s1044_s11  ;;  %s1979_s13 = scalar_lea.hbm %s2029_s5, %s1163_s19 }
  0x40   : > { %v1685_v39 = vmul.u32 2, %v1646_v17  ;;  %v272_v40 = vadd.s32 128, %v1679_v38  ;;  %v273_v41 = vadd.s32 136, %v1679_v38  ;;  %v257_v42 = vadd.s32 8, %v1679_v38  ;;  %s962_s14 = sshll.u32 %s245_s12, 4  ;;  %s949_s15 = scalar_lea.sflag [#allocation5], %s1607_s18  ;;  %s1974_s14 = int_to_ptr.vmem [resolvable:$true] %s962_s14 }
  0x41   : > { %1081 = vmatmul.mubr.msk.bf16.vlgmr.msra.gmra.mrb[0].mxu0 %vm2034_vm0, %v1625_v4  ;;  %vm2031_vm4 = vcmp.eq.s32.totalorder %v1653_v21, 255  ;;  %v274_v43 = vadd.s32 144, %v1679_v38  ;;  %v275_v44 = vadd.s32 152, %v1679_v38  ;;  %v258_v45 = vadd.s32 16, %v1679_v38  ;;  %s1392_s30 = scalar_lea.vmem %s1974_s14, 32  ;;  %p2094_p11 = scmp.ne.s32.totalorder %s2043_s6, 0 }
  0x42   : > { %457 = vmatprep.mubr.bf16.mxu0 %v1463_v1  ;;  %vm291_vm5 = vcmp.eq.s32.totalorder %v1679_v38, %v1685_v39  ;;  %vm307_vm6 = vcmp.eq.s32.totalorder %v272_v40, %v1685_v39  ;;  %vm308_vm7 = vcmp.eq.s32.totalorder %v273_v41, %v1685_v39  ;;  %vm292_vm8 = vcmp.eq.s32.totalorder %v257_v42, %v1685_v39  ;;  %v1361_v40 = vld [vmem:[%s1611_s26 + $0x14] ss:$8 sps:$4 sm:$0xff]   ;;  %v1359_v42 = vld [vmem:[%s1611_s26 + $0x10] ss:$8 sps:$4 sm:$0xff]   ;;  %p1393_p6 = scmp.ne.s32.totalorder %s1974_s14, %s1392_s30  ;;  %s1468_s4 = smov [#allocation6]  }
  0x43   : > { %v259_v46 = vadd.s32 24, %v1679_v38  ;;  %vm1699_vm9 = vmpackc.low %vm308_vm7, %vm307_vm6  ;;  %vm309_vm10 = vcmp.eq.s32.totalorder %v274_v43, %v1685_v39  ;;  %vm310_vm11 = vcmp.eq.s32.totalorder %v275_v44, %v1685_v39  ;;  %vm293_vm12 = vcmp.eq.s32.totalorder %v258_v45, %v1685_v39  ;;  %v1869_v41 = vld [vmem:[%s2027_s3] sm:$0x7]  ;;  %s1396_s16 = sshll.u32 %s1468_s4, 4  ;;  %s1397_s16 = int_to_ptr.vmem [resolvable:$false] %s1396_s16 }
  0x44   : > { %v276_v48 = vadd.s32 160, %v1679_v38  ;;  %1235 = vmatprep.subr.msk.bf16.mxu0 %vm1699_vm9, %v1467_v49  ;;  %vm1713_vm13 = vmpackc.low %vm292_vm8, %vm291_vm5  ;;  %v277_v51 = vadd.s32 168, %v1679_v38  ;;  %v260_v52 = vadd.s32 32, %v1679_v38  ;;  %v261_v53 = vadd.s32 40, %v1679_v38  ;;  %p1394_p12 = pnand %p1393_p6, %p2094_p11  ;;  %s1398_s17 = scalar_lea.vmem %s1397_s16, 64 }
  0x45   : > { %vm294_vm14 = vcmp.eq.s32.totalorder %v259_v46, %v1685_v39  ;;  %1237 = vmatpush3.bf16.msk.msra.mxu0 %vm1713_vm13, %v1467_v49  ;;  %vm1724_vm15 = vmpackc.low %vm310_vm11, %vm309_vm10  ;;  %v278_v55 = vadd.s32 176, %v1679_v38  ;;  %v279_v56 = vadd.s32 184, %v1679_v38  ;;  %v262_v59 = vadd.s32 48, %v1679_v38  ;;  %p1399_p8 = scmp.lt.s32.totalorder %s1974_s14, %s1397_s16  ;;  %p1400_p10 = scmp.lt.s32.totalorder %s1398_s17, %s1392_s30 }
  0x46   : > { %vm311_vm5 = vcmp.eq.s32.totalorder %v276_v48, %v1685_v39  ;;  %1239 = vmatprep.subr.msk.bf16.mxu0 %vm1724_vm15, %v1467_v49  ;;  %vm1736_vm6 = vmpackc.low %vm294_vm14, %vm293_vm12  ;;  %vm312_vm7 = vcmp.eq.s32.totalorder %v277_v51, %v1685_v39  ;;  %vm295_vm10 = vcmp.eq.s32.totalorder %v260_v52, %v1685_v39  ;;  %vm296_vm11 = vcmp.eq.s32.totalorder %v261_v53, %v1685_v39  ;;  %p1395_p13 = pneg %p1394_p12 }
  0x47   : > { %vm1741_vm8 = vmpackc.low %vm312_vm7, %vm311_vm5  ;;  %v263_v60 = vadd.s32 56, %v1679_v38  ;;  %vm314_vm12 = vcmp.eq.s32.totalorder %v279_v56, %v1685_v39  ;;  %v280_v61 = vadd.s32 192, %v1679_v38  ;;  %v281_v62 = vadd.s32 200, %v1679_v38  ;;  %p1401_p0 = por %p1400_p10, %p1399_p8 }
  0x48   : > { %vm1759_vm14 = vmpackc.low %vm296_vm11, %vm295_vm10  ;;  %vm297_vm7 = vcmp.eq.s32.totalorder %v262_v59, %v1685_v39  ;;  %v264_v2 = vadd.s32 64, %v1679_v38  ;;  %v265_v3 = vadd.s32 72, %v1679_v38  ;;  %v282_v5 = vadd.s32 208, %v1679_v38 }
  0x49   : > { %1082 = vmatmul.mubr.msk.bf16.gmra.mrb[4].mxu0 %vm2034_vm0, %v1636_v6  ;;  %v2057_v63 = vsel %vm1759_vm14, 4294967295, %v2056_v63  ;;  %vm316_vm0 = vcmp.eq.s32.totalorder %v281_v62, %v1685_v39  ;;  %v687_v15 = vsub.s32 0, %v1679_v38  ;;  %p1402_p2 = pnand %p1401_p0, %p1395_p13 }
  0x4a   : > { %1241 = vmatpush3.bf16.msk.msra.mxu0 %vm1736_vm6, %v1467_v49  ;;  %vm299_vm11 = vcmp.eq.s32.totalorder %v264_v2, %v1685_v39 }
  0x4b   : > { %1243 = vmatprep.subr.msk.bf16.mxu0 %vm1741_vm8, %v1467_v49 }
  0x4e   : > { %1245 = vmatpush3.bf16.msk.msra.mxu0 %vm1759_vm14, %v1467_v49 }
  0xbd   : > { %v1644_v16 = vpop.permute.xlu0 %502 }
 0x114   : > { %v449_v7 = vpop.f32.mrb[0].mxu0 }
 0x115   : > { %468 = vrot.lane.b32.xlu0 %v449_v7, %s1464_s29  ;;  %v451_v8 = vpop.f32.mrb[1].mxu0  ;;  %v283_v7 = vadd.s32 216, %v1679_v38 }
 0x116   : > { %470 = vrot.lane.b32.xlu1 %v451_v8, %s1464_s29  ;;  %v453_v9 = vpop.f32.mrb[2].mxu0  ;;  %v2060_v8 = vmov 0 }
 0x117   : > { %v455_v10 = vpop.f32.mrb[3].mxu0 }
 0x11c   : > { %v459_v11 = vpop.f32.mrb[4].mxu0 }
 0x11d   : > { %485 = vrot.lane.b32.xlu1 %v459_v11, %s1465_s8  ;;  %v461_v12 = vpop.f32.mrb[5].mxu0  ;;  %v267_v11 = vadd.s32 88, %v1679_v38 }
 0x11e   : > { %487 = vrot.lane.b32.xlu0 %v461_v12, %s1465_s8  ;;  %v463_v13 = vpop.f32.mrb[6].mxu0  ;;  %v284_v12 = vadd.s32 224, %v1679_v38 }
 0x11f   : > { %v464_v14 = vpop.f32.mrb[7].mxu0  ;;  %v285_v13 = vadd.s32 232, %v1679_v38 }
 0x120   : > { %v2064_v14 = vmov 0 }
 0x187   : > { %v469_v18 = vpop.permute.xlu0 %468 }
 0x188   : > { %v471_v19 = vpop.permute.xlu1 %470 }
 0x189   : > { %v474_v20 = vsel %vm2033_vm1, %v471_v19, %v469_v18  ;;  %v473_v23 = vsel %vm2033_vm1, %v469_v18, %v471_v19  ;;  %vm315_vm1 = vcmp.eq.s32.totalorder %v280_v61, %v1685_v39  ;;  %v268_v18 = vadd.s32 96, %v1679_v38 }
 0x18a   : > { %v479_v22 = vsel %vm2032_vm2, 0.0, %v474_v20  ;;  %v482_v28 = vadd.f32 %v473_v23, %v455_v10  ;;  %vm298_vm2 = vcmp.eq.s32.totalorder %v263_v60, %v1685_v39  ;;  %vm1785_vm10 = vmpackc.low %vm316_vm0, %vm315_vm1  ;;  %v266_v10 = vadd.s32 80, %v1679_v38 }
 0x18b   : > { %v481_v25 = vadd.f32 %v479_v22, %v453_v9  ;;  %v2062_v9 = vmov 0  ;;  %v269_v19 = vadd.s32 104, %v1679_v38  ;;  %v286_v20 = vadd.s32 240, %v1679_v38 }
 0x18c   : > { %v2063_v9 = vsel %vm1785_vm10, 4294967295, %v2062_v9  ;;  %v287_v22 = vadd.s32 248, %v1679_v38 }
 0x18d   : > { %vm321_vm14 = vcmp.eq.s32.totalorder %v286_v20, %v1685_v39 }
 0x18f   : > { %v486_v24 = vpop.permute.xlu1 %485 }
 0x190   : > { %v488_v26 = vpop.permute.xlu0 %487 }
 0x191   : > { %v490_v29 = vsel %vm2035_vm3, %v486_v24, %v488_v26  ;;  %v491_v30 = vsel %vm2035_vm3, %v488_v26, %v486_v24  ;;  %vm317_vm3 = vcmp.eq.s32.totalorder %v282_v5, %v1685_v39 }
 0x192   : > { %v497_v31 = vsel %vm2031_vm4, 0.0, %v491_v30  ;;  %v498_v32 = vadd.f32 %v490_v29, %v481_v25  ;;  %vm313_vm4 = vcmp.eq.s32.totalorder %v278_v55, %v1685_v39 }
 0x193   : > { %v499_v33 = vadd.f32 %v497_v31, %v482_v28  ;;  %vm1763_vm5 = vmpackc.low %vm314_vm12, %vm313_vm4  ;;  %vm300_vm12 = vcmp.eq.s32.totalorder %v265_v3, %v1685_v39 }
 0x194   : > { %v1669_v34 = vadd.f32 %v1644_v16, %v498_v32  ;;  %v2059_v0 = vsel %vm1763_vm5, 4294967295, %v2058_v0  ;;  %1247 = vmatprep.subr.msk.bf16.mxu0 %vm1763_vm5, %v1467_v49  ;;  %vm1781_vm4 = vmpackc.low %vm298_vm2, %vm297_vm7  ;;  %vm318_vm5 = vcmp.eq.s32.totalorder %v283_v7, %v1685_v39  ;;  %vm301_vm2 = vcmp.eq.s32.totalorder %v266_v10, %v1685_v39 }
 0x195   : > { %v1672_v35 = vadd.f32 %v1644_v16, %v499_v33  ;;  %v2061_v8 = vsel %vm1781_vm4, 4294967295, %v2060_v8  ;;  %1249 = vmatpush3.bf16.msk.msra.mxu0 %vm1781_vm4, %v1467_v49  ;;  %vm1803_vm0 = vmpackc.low %vm300_vm12, %vm299_vm11  ;;  %vm302_vm7 = vcmp.eq.s32.totalorder %v267_v11, %v1685_v39  ;;  %vm319_vm4 = vcmp.eq.s32.totalorder %v284_v12, %v1685_v39 }
 0x196   : > { %v507_v36 = vmax.f32 %v1669_v34, 0.0  ;;  %1251 = vmatprep.subr.msk.bf16.mxu0 %vm1785_vm10, %v1467_v49  ;;  %v2065_v14 = vsel %vm1803_vm0, 4294967295, %v2064_v14  ;;  %vm1807_vm1 = vmpackc.low %vm318_vm5, %vm317_vm3  ;;  %vm320_vm10 = vcmp.eq.s32.totalorder %v285_v13, %v1685_v39  ;;  %vm303_vm11 = vcmp.eq.s32.totalorder %v268_v18, %v1685_v39 }
 0x197   : > { %v508_v37 = vmax.f32 %v1672_v35, 0.0  ;;  %vm1825_vm3 = vmpackc.low %vm302_vm7, %vm301_vm2  ;;  %vm304_vm12 = vcmp.eq.s32.totalorder %v269_v19, %v1685_v39  ;;  %vm2076_vm2 = vcmp.lt.s32.totalorder %v1646_v17, 127 }
 0x198   : > { %509 = vrot.lane.b32.xlu1 %v507_v36, %s1465_s8  ;;  %vm1829_vm5 = vmpackc.low %vm320_vm10, %vm319_vm4 }
 0x199   : > { %511 = vrot.lane.b32.xlu0 %v508_v37, %s1465_s8  ;;  %1253 = vmatpush3.bf16.msk.msra.mxu0 %vm1803_vm0, %v1467_v49  ;;  %vm322_vm0 = vcmp.eq.s32.totalorder %v287_v22, %v1685_v39  ;;  %vm1843_vm4 = vmpackc.low %vm304_vm12, %vm303_vm11  ;;  %vm2080_vm11 = vnez %v2057_v63 }
 0x19a   : > { %1255 = vmatprep.subr.msk.bf16.mxu0 %vm1807_vm1, %v1467_v49  ;;  %vm1847_vm10 = vmpackc.low %vm322_vm0, %vm321_vm14  ;;  %vm517_vm14 = vcmask 64512   ;;  %vm2078_vm0 = vcmask 130048  }
 0x19b   : > { %vm2077_vm7 = vmmov %vm2076_vm2 }
 0x19d   : > { %1257 = vmatpush3.bf16.msk.msra.mxu0 %vm1825_vm3, %v1467_v49 }
 0x19e   : > { %1259 = vmatprep.subr.msk.bf16.mxu0 %vm1829_vm5, %v1467_v49 }
 0x1a1   : > { %1261 = vmatpush3.bf16.msk.msra.mxu0 %vm1843_vm4, %v1467_v49 }
 0x1a2   : > { %1263 = vmatprep.subr.msk.bf16.mxu0 %vm1847_vm10, %v1467_v49 }
 0x20a   : > { %v510_v28 = vpop.permute.xlu1 %509 }
 0x20b   : > { %v512_v29 = vpop.permute.xlu0 %511 }
 0x20c   : > { %v513_v30 = vsel %vm2076_vm2, %v510_v28, %v512_v29  ;;  %v514_v31 = vsel %vm2077_vm7, %v512_v29, %v510_v28  ;;  %vm2088_vm7 = vmmov %vm2076_vm2 }
 0x20d   : > { %v516_v32 = vmax.f32 %v508_v37, %v514_v31  ;;  %v515_v33 = vmax.f32 %v507_v36, %v513_v30 }
 0x20f   : > { %521 = vmatprep.subr.mxu1 %v516_v32 }
 0x210   : > { %522 = vmatpush1.msra.mxu1 %v515_v33 }
 0x211   : > { %1083 = vmatmul.mubr.msk.f32.vlgmr.msra.gmra.mrb[0].mxu1 %vm517_vm14, %v1869_v41  ;;  %704 = vmatprep.subr.bf16.mxu1 %v1361_v40 }
 0x212   : > { %705 = vmatpush1.bf16.msra.mxu1 %v1359_v42  ;;  %736 = vmatprep.mubr.bf16.mxu1 %v1463_v1 }
 0x213   : > { %1267 = vmatprep.subr.msk.bf16.mxu1 %vm1699_vm9, %v1467_v49  ;;  %vm2079_vm9 = vmmov %vm2078_vm0 }
 0x215   : > { %1120 = vmatmul.mubr.msk.bf16.vlgmr.msra.gmra.mrb[4].mxu1 %vm2078_vm0, %v1625_v4  ;;  %v271_v4 = vadd.s32 120, %v1679_v38  ;;  %vm2089_vm0 = vcmp.eq.s32.totalorder %v1653_v21, 255 }
 0x216   : > { %746 = vmatprep.mubr.bf16.mxu1 %v1463_v1  ;;  %1269 = vmatpush3.bf16.msk.msra.mxu1 %vm1713_vm13, %v1467_v49  ;;  %vm2081_vm13 = vnez %v2059_v0  ;;  %v270_v1 = vadd.s32 112, %v1679_v38  ;;  %v254_v0 = vld [vmem:[#allocation2] sm:$0x1] }
 0x217   : > { %1271 = vmatprep.subr.msk.bf16.mxu1 %vm1724_vm15, %v1467_v49  ;;  %vm2082_vm15 = vnez %v2061_v8 }
 0x21a   : > { %1273 = vmatpush3.bf16.msk.msra.mxu1 %vm1736_vm6, %v1467_v49  ;;  %vm2083_vm6 = vnez %v2063_v9 }
 0x21b   : > { %1275 = vmatprep.subr.msk.bf16.mxu1 %vm1741_vm8, %v1467_v49  ;;  %vm2084_vm8 = vnez %v2065_v14 }
 0x21d   : > { %1121 = vmatmul.mubr.msk.bf16.gmra.mrb[8].mxu1 %vm2079_vm9, %v1636_v6  ;;  %vm2090_vm9 = vmmov %vm2076_vm2 }
 0x21e   : > { %1277 = vmatpush3.bf16.msk.msra.mxu1 %vm2080_vm11, %v1467_v49  ;;  %vm2091_vm11 = vmmov %vm2076_vm2 }
 0x21f   : > { %1279 = vmatprep.subr.msk.bf16.mxu1 %vm2081_vm13, %v1467_v49 }
 0x222   : > { %1281 = vmatpush3.bf16.msk.msra.mxu1 %vm2082_vm15, %v1467_v49  ;;  %vm669_vm15 = vcmp.eq.s32.totalorder %v1646_v17, 127 }
 0x223   : > { %1283 = vmatprep.subr.msk.bf16.mxu1 %vm2083_vm6, %v1467_v49 }
 0x226   : > { %1285 = vmatpush3.bf16.msk.msra.mxu1 %vm2084_vm8, %v1467_v49 }
 0x227   : > { %1287 = vmatprep.subr.msk.bf16.mxu1 %vm1807_vm1, %v1467_v49  ;;  %vm305_vm1 = vcmp.eq.s32.totalorder %v270_v1, %v1685_v39 }
 0x22a   : > { %1289 = vmatpush3.bf16.msk.msra.mxu1 %vm1825_vm3, %v1467_v49  ;;  %vm306_vm3 = vcmp.eq.s32.totalorder %v271_v4, %v1685_v39 }
 0x22b   : > { %1291 = vmatprep.subr.msk.bf16.mxu1 %vm1829_vm5, %v1467_v49  ;;  %vm1264_vm12 = vmpackc.low %vm306_vm3, %vm305_vm1  ;;  %vm2085_vm5 = vcmp.lt.s32.totalorder %v1646_v17, 1 }
 0x22c   : > { %1265 = vmatpush3.bf16.msk.msra.mxu0 %vm1264_vm12, %v1467_v49 }
 0x22e   : > { %1293 = vmatpush3.bf16.msk.msra.mxu1 %vm1843_vm4, %v1467_v49  ;;  %vm2086_vm4 = vcmp.eq.s32.totalorder %v1646_v17, 0 }
 0x22f   : > { %1295 = vmatprep.subr.msk.bf16.mxu1 %vm1847_vm10, %v1467_v49  ;;  %vm2087_vm10 = vmmov %vm2085_vm5 }
 0x230   : > { %vm2092_vm13 = vmmov %vm2086_vm4 }
 0x232   : > { %1297 = vmatpush3.bf16.msk.msra.mxu1 %vm1264_vm12, %v1467_v49 }
 0x2e4   : > { %v587_v6 = vpop.f32.mrb[0].mxu1 }
 0x2e5   : > { %v589_v34 = vpop.f32.mrb[1].mxu1 }
 0x2e6   : > { %656 = vmatprep.mubr.f32.mxu0 %v589_v34 }
 0x2e7   : > { %657 = vmatmul.mubr.f32.vlgmr.msra.gmra.mrb[8].mxu0 %v587_v6 }
 0x2e8   : > { %v738_v35 = vpop.f32.mrb[4].mxu1  ;;  %851 = vmatprep.mubr.f32.mxu0 %v1466_v27 }
 0x2e9   : > { %755 = vrot.lane.b32.xlu1 %v738_v35, %s1464_s29  ;;  %v740_v36 = vpop.f32.mrb[5].mxu1 }
 0x2ea   : > { %757 = vrot.lane.b32.xlu0 %v740_v36, %s1464_s29  ;;  %v742_v37 = vpop.f32.mrb[6].mxu1 }
 0x2eb   : > { %v744_v43 = vpop.f32.mrb[7].mxu1 }
 0x2f0   : > { %v748_v39 = vpop.f32.mrb[8].mxu1 }
 0x2f1   : > { %765 = vrot.lane.b32.xlu1 %v748_v39, %s1465_s8  ;;  %v750_v44 = vpop.f32.mrb[9].mxu1 }
 0x2f2   : > { %767 = vrot.lane.b32.xlu0 %v750_v44, %s1465_s8  ;;  %v752_v45 = vpop.f32.mrb[10].mxu1 }
 0x2f3   : > { %v753_v46 = vpop.f32.mrb[11].mxu1 }
 0x35b   : > { %v756_v47 = vpop.permute.xlu1 %755 }
 0x35c   : > { %v758_v48 = vpop.permute.xlu0 %757 }
 0x35d   : > { %v760_v27 = vsel %vm2085_vm5, %v758_v48, %v756_v47  ;;  %v759_v50 = vsel %vm2087_vm10, %v756_v47, %v758_v48 }
 0x35e   : > { %v761_v49 = vsel %vm2086_vm4, 0.0, %v760_v27  ;;  %v764_v54 = vadd.f32 %v759_v50, %v744_v43 }
 0x35f   : > { %v763_v52 = vadd.f32 %v761_v49, %v742_v37 }
 0x363   : > { %v766_v51 = vpop.permute.xlu1 %765 }
 0x364   : > { %v768_v53 = vpop.permute.xlu0 %767 }
 0x365   : > { %v769_v55 = vsel %vm2076_vm2, %v766_v51, %v768_v53  ;;  %v770_v56 = vsel %vm2088_vm7, %v768_v53, %v766_v51 }
 0x366   : > { %v772_v57 = vsel %vm2089_vm0, 0.0, %v770_v56  ;;  %v773_v58 = vadd.f32 %v769_v55, %v763_v52 }
 0x367   : > { %v774_v59 = vadd.f32 %v772_v57, %v764_v54 }
 0x368   : > { %v775_v60 = vadd.f32 %v773_v58, %v1644_v16 }
 0x369   : > { %v776_v61 = vadd.f32 %v774_v59, %v1644_v16 }
 0x36a   : > { %v777_v62 = vmax.f32 %v775_v60, 0.0 }
 0x36b   : > { %v778_v63 = vmax.f32 %v776_v61, 0.0 }
 0x36c   : > { %779 = vrot.lane.b32.xlu1 %v777_v62, %s1465_s8 }
 0x36d   : > { %781 = vrot.lane.b32.xlu0 %v778_v63, %s1465_s8 }
 0x370   : > { %682 = vperm.xlu1 %1353, %v254_v0  }
 0x3ba   : > { %v1196_v2 = vpop.f32.mrb[8].mxu0 }
 0x3bb   : > { %v1197_v3 = vpop.f32.mrb[9].mxu0 }
 0x3bc   : > { %v1198_v5 = vadd.f32 %v1197_v3, %v1196_v2 }
 0x3be   : > { %662 = vrot.lane.b32.xlu0 %v1198_v5, %s1464_s29  ;;  %v671_v21 = vrot.slane %v1198_v5, 2 }
 0x3c2   : > { %673 = vrot.lane.b32.xlu0 %v671_v21, %s1465_s8 }
 0x3de   : > { %v780_v7 = vpop.permute.xlu1 %779 }
 0x3df   : > { %v782_v8 = vpop.permute.xlu0 %781 }
 0x3e0   : > { %v783_v16 = vsel %vm2090_vm9, %v780_v7, %v782_v8  ;;  %v784_v9 = vsel %vm2091_vm11, %v782_v8, %v780_v7 }
 0x3e1   : > { %v785_v10 = vmax.f32 %v777_v62, %v783_v16  ;;  %v786_v11 = vmax.f32 %v778_v63, %v784_v9 }
 0x3e3   : > { %787 = vmatprep.subr.mxu0 %v786_v11 }
 0x3e4   : > { %788 = vmatpush1.msra.mxu0 %v785_v10 }
 0x3e5   : > { %1122 = vmatmul.mubr.msk.f32.vlgmr.msra.gmra.mrb[10].mxu0 %vm517_vm14, %v1869_v41  ;;  %vm2093_vm14 = vmmov %vm2086_vm4 }
 0x3ef   : > { %v683_v18 = vpop.permute.xlu1 %682 }
 0x3f0   : > { %v688_v24 = vrot.slane %v683_v18, %v687_v15 }
 0x430   : > { %v663_v12 = vpop.permute.xlu0 %662 }
 0x431   : > { %v664_v13 = vsel %vm2092_vm13, 0.0, %v663_v12 }
 0x432   : > { %v666_v14 = vrot.slane %v664_v13, 7 }
 0x434   : > { %v674_v19 = vpop.permute.xlu0 %673  ;;  %v668_v22 = vadd.f32 %v1198_v5, %v666_v14 }
 0x435   : > { %v675_v20 = vsel %vm669_vm15, 0.0, %v674_v19 }
 0x436   : > { %v677_v23 = vrot.slane %v675_v20, 7 }
 0x438   : > { %v679_v25 = vadd.f32 %v677_v23, %v668_v22 }
 0x43a   : > { %v689_v26 = vadd.f32 %v688_v24, %v679_v25 }
 0x43c   : > { %690 = vst [vmem:[%s245_s12 - $0x1] sm:$0x2] %v689_v26 }
 0x4b8   : > { %v853_v28 = vpop.f32.mrb[10].mxu0 }
 0x4b9   : > { %v855_v29 = vpop.f32.mrb[11].mxu0 }
 0x4ba   : > { %922 = vmatprep.mubr.f32.mxu1 %v855_v29 }
 0x4bb   : > { %923 = vmatmul.mubr.f32.vlgmr.msra.gmra.mrb[2].mxu1 %v853_v28 }
 0x58e   : > { %v1231_v30 = vpop.f32.mrb[2].mxu1 }
 0x58f   : > { %v1232_v38 = vpop.f32.mrb[3].mxu1 }
 0x590   : > { %v1233_v31 = vadd.f32 %v1232_v38, %v1231_v30 }
 0x592   : > { %928 = vrot.lane.b32.xlu1 %v1233_v31, %s1464_s29  ;;  %v936_v32 = vrot.slane %v1233_v31, 2 }
 0x596   : > { %938 = vrot.lane.b32.xlu1 %v936_v32, %s1465_s8 }
 0x604   : > { %v929_v33 = vpop.permute.xlu1 %928 }
 0x605   : > { %v930_v40 = vsel %vm2093_vm14, 0.0, %v929_v33 }
 0x606   : > { %v932_v41 = vrot.slane %v930_v40, 7 }
 0x608   : > { %v939_v42 = vpop.permute.xlu1 %938  ;;  %v934_v4 = vadd.f32 %v1233_v31, %v932_v41 }
 0x609   : > { %v940_v1 = vsel %vm669_vm15, 0.0, %v939_v42 }
 0x60a   : > { %v942_v6 = vrot.slane %v940_v1, 7 }
 0x60c   : > { %v944_v34 = vadd.f32 %v942_v6, %v934_v4 }
 0x60e   : > { %v945_v35 = vadd.f32 %v944_v34, %v688_v24 }
 0x610   : > { %1155 = vst [vmem:[%s245_s12] sm:$0x2] %v945_v35 }
 0x611   : > { %1405 = shalt.err (!%p1402_p2)
}
 0x612   : > { %s1406_s27 = scalar_lea.hbm %s1979_s13, 32  ;;  %s1410_s10 = scalar_lea.hbm %s2029_s5, 64 }
 0x613   : > { %p1407_p4 = scmp.ne.s32.totalorder %s1979_s13, %s1406_s27  ;;  %p1411_p9 = scmp.lt.u32.totalorder %s1979_s13, %s2029_s5 }
 0x614   : > { %p1412_p1 = scmp.lt.u32.totalorder %s1410_s10, %s1406_s27  ;;  %p1414_p6 = scmp.lt.u32.totalorder %s1406_s27, %s1979_s13 }
 0x615   : > { %p1408_p5 = pnand %p1407_p4, %p2094_p11 }
 0x616   : > { %p1413_p3 = por %p1412_p1, %p1411_p9 }
 0x617   : > { %p1409_p7 = pneg %p1408_p5 }
 0x618   : > { %p1415_p12 = por %p1414_p6, %p1413_p3 }
 0x61a   : > { %p1416_p13 = pnand %p1415_p12, %p1409_p7 }
 0x61c   : > { %1419 = shalt.err (!%p1416_p13)
}
 0x61d   : > { %s1469_s19 = smov 16  }
 0x61e   : > { %1300 = dma.vmem_to_hbm [thread:$0]  (%p2094_p11), %s1974_s14, 32, %s1979_s13, %s949_s15, %s1469_s19, %s1469_s19, %s1464_s29  }
 0x61f PF: > { %s977_s24 = sand.u32 1, %s1446_s20   ;;  %p2095_p8 = scmp.ne.s32.totalorder %s2044_s7, 0 }
 0x620   : > { %p2096_p10 = scmp.ge.s32.totalorder %s1458_s23, 2  ;;  %s978_s26 = scalar_lea.sflag [#allocation5], %s977_s24 }
 0x622   : > { %p1307_p0 = pnand %p2096_p10, %p2095_p8 }
 0x624   : > { %1441 = dma.done.wait (!%p1307_p0), %s978_s26, 32  }
 0x625   : > { %1443 = vsyncadd (!%p1307_p0), %s978_s26, 4294967264  ;;  %p20_p2 = scmp.ge.s32.totalorder %s1528_s25, 4   ;;  %s2097_s20 = smov %s1450_s21 }
 0x626   : > { %s2098_s21 = smov %s1454_s22  ;;  %s2099_s22 = smov %s1540_s28 }
 0x627   : > { %s2100_s23 = smov %s1528_s25  ;;  %22 = sbr.rel (!%p20_p2) target bundleno = 8 (0x8), region = 87 }
 0x62e   :  { %983 = vsyncpa [#allocation4], 1 }
 0x62f   :  { %985 = vsyncpa [#allocation4 + $0x1], 1 }
 0x630   :  { %986 = vsyncpa [#allocation5], 1 }
 0x631   :  { %988 = vsyncpa [#allocation5 + $0x1], 1 }

</bundles_post_ra>
